<compile_context>
chip_gen: v5e
topology: v5e:2x2
jax: 0.10.0
libtpu: 0.0.40
codegen_flags: <defaults>
</compile_context>

<pallas_src>
from functools import partial

import jax
import jax.numpy as jnp
from jax.experimental import pallas as pl
from jax.experimental.pallas import tpu as pltpu

LANE = 128


# ----------------------------------------------------------------------------
# Fused kernel: dropout'd inputs -> (2-layer GraphConv encoder) x2 -> SCE loss
# ----------------------------------------------------------------------------
def fused_cg_kernel(a_ref, x1_ref, x2_ref, maskv_ref,
                    w0_ref, b0_ref, g0_ref, be0_ref,
                    w1_ref, b1_ref, g1_ref, be1_ref,
                    alpha_ref, loss_ref, *, n_nodes, num_mask):
    a = a_ref[...]                                    # (N, N) bf16, resident
    inv_n = 1.0 / n_nodes

    def batch_norm(h, gamma, beta):
        # BatchNorm1d, training mode: biased batch stats over the node axis.
        mean = jnp.sum(h, axis=0, keepdims=True) * inv_n
        diff = h - mean
        var = jnp.sum(diff * diff, axis=0, keepdims=True) * inv_n
        return diff * jax.lax.rsqrt(var + 1e-5) * gamma + beta

    def encoder(x_bf16, s):
        # s is a static Python int selecting online (0) / target (1) params.
        # layer 0: GraphConv(in -> hidden) + BN + PReLU
        xw = jnp.dot(x_bf16, w0_ref[s], preferred_element_type=jnp.float32)
        h = jnp.dot(a, xw.astype(jnp.bfloat16),
                    preferred_element_type=jnp.float32)
        h = batch_norm(h + b0_ref[s], g0_ref[s], be0_ref[s])
        h = jnp.where(h >= 0.0, h, alpha_ref[s] * h)   # PReLU, scalar slope (SMEM)
        # layer 1: GraphConv(hidden -> out) + BN (no activation on last layer)
        hw = jnp.dot(h.astype(jnp.bfloat16), w1_ref[s],
                     preferred_element_type=jnp.float32)
        h = jnp.dot(a, hw.astype(jnp.bfloat16),
                    preferred_element_type=jnp.float32)
        return batch_norm(h + b1_ref[s], g1_ref[s], be1_ref[s])

    h1 = encoder(x1_ref[...], 0)   # online encoder on masked+dropout features
    h2 = encoder(x2_ref[...], 1)   # target encoder (frozen) on dropout features

    # SCE loss, alpha=1: mean over masked rows of  1 - <h1/||h1||, h2/||h2||>.
    eps2 = 1e-24                   # F.normalize eps (1e-12), squared
    s1 = jnp.sum(h1 * h1, axis=-1, keepdims=True)
    s2 = jnp.sum(h2 * h2, axis=-1, keepdims=True)
    d12 = jnp.sum(h1 * h2, axis=-1, keepdims=True)
    cos = d12 * jax.lax.rsqrt(jnp.maximum(s1, eps2)) \
              * jax.lax.rsqrt(jnp.maximum(s2, eps2))
    per_row = (1.0 - cos) * maskv_ref[...]             # (N, 1); 0 off-mask
    loss_ref[...] = jnp.sum(per_row, axis=0, keepdims=True) * (1.0 / num_mask)


# ----------------------------------------------------------------------------
# Plain-JAX glue: init, graph construction, dropout/mask, padding & packing
# ----------------------------------------------------------------------------
def _ceil_to(v, m):
    return ((v + m - 1) // m) * m


def _pad_last(x, to):
    pad = to - x.shape[-1]
    if pad <= 0:
        return x
    cfg = [(0, 0)] * (x.ndim - 1) + [(0, pad)]
    return jnp.pad(x, cfg)


def _pad2(w, r, c):
    return jnp.pad(w, ((0, r - w.shape[0]), (0, c - w.shape[1])))


def xavier_uniform(key, fan_in, fan_out):
    limit = jnp.sqrt(6.0 / (fan_in + fan_out))
    return jax.random.uniform(key, (fan_in, fan_out), jnp.float32,
                              minval=-limit, maxval=limit)


def make_encoder_params(key, in_dim, hidden, out_dim):
    k0, k1 = jax.random.split(key)
    return {
        "w0": xavier_uniform(k0, in_dim, hidden),
        "b0": jnp.zeros((1, hidden), jnp.float32),
        "g0": jnp.ones((1, hidden), jnp.float32),
        "be0": jnp.zeros((1, hidden), jnp.float32),
        "a0": jnp.float32(0.25),                       # PReLU slope (default init)
        "w1": xavier_uniform(k1, hidden, out_dim),
        "b1": jnp.zeros((1, out_dim), jnp.float32),
        "g1": jnp.ones((1, out_dim), jnp.float32),
        "be1": jnp.zeros((1, out_dim), jnp.float32),
    }


def build_graph(n):
    # deterministic graph: undirected ring + self-loops, GCN "both" norm
    idx = jnp.arange(n)
    a = jnp.zeros((n, n), jnp.float32)
    a = a.at[idx, (idx + 1) % n].set(1.0)
    a = a.at[(idx + 1) % n, idx].set(1.0)
    a = a.at[idx, idx].set(1.0)
    deg = jnp.sum(a, axis=1)
    d_inv_sqrt = 1.0 / jnp.sqrt(jnp.maximum(deg, 1.0))
    return a * d_inv_sqrt[:, None] * d_inv_sqrt[None, :]


def cg_forward(a_hat, feat, online_params, target_params, enc_mask_token,
               rate, p1, key):
    n, in_dim = feat.shape
    hidden = online_params["w0"].shape[1]
    out_dim = online_params["w1"].shape[1]
    cin_p, hid_p, out_p = (_ceil_to(in_dim, LANE), _ceil_to(hidden, LANE),
                           _ceil_to(out_dim, LANE))

    k_perm, k_do1, k_do2 = jax.random.split(key, 3)

    # mask(): random node permutation, first rate*N nodes get the mask token
    perm = jax.random.permutation(k_perm, n)
    num_mask = int(rate * n)
    mask_nodes = perm[:num_mask]
    x = feat.at[mask_nodes].set(0.0).at[mask_nodes].add(enc_mask_token[0])

    # nn.Dropout(p1), training mode (independent masks for the two encoders).
    # TODO(synk): RNG (permutation + dropout masks) stays in plain JAX; the
    #             torch RNG stream is not reproduced bit-for-bit.
    def dropout(v, k):
        keep = jax.random.bernoulli(k, 1.0 - p1, v.shape)
        return jnp.where(keep, v / (1.0 - p1), 0.0).astype(jnp.float32)

    x1 = dropout(x, k_do1)       # online-encoder input
    x2 = dropout(feat, k_do2)    # target-encoder input (output is detached;
                                 # forward value is unchanged)

    # 0/1 node weights replace the masked-row gather inside the kernel.
    maskv = jnp.zeros((n, 1), jnp.float32).at[mask_nodes, 0].set(1.0)

    # Pack online/target params into stacked, lane-dense-padded arrays.
    def stack_w(name, r, c):
        return jnp.stack([_pad2(online_params[name], r, c),
                          _pad2(target_params[name], r, c)]).astype(jnp.bfloat16)

    def stack_v(name, c):
        return jnp.stack([_pad_last(online_params[name], c),
                          _pad_last(target_params[name], c)]).astype(jnp.float32)

    w0 = stack_w("w0", cin_p, hid_p)                       # (2, cin_p, hid_p) bf16
    w1 = stack_w("w1", hid_p, out_p)                       # (2, hid_p, out_p) bf16
    b0, g0, be0 = stack_v("b0", hid_p), stack_v("g0", hid_p), stack_v("be0", hid_p)
    b1, g1, be1 = stack_v("b1", out_p), stack_v("g1", out_p), stack_v("be1", out_p)
    alpha = jnp.stack([online_params["a0"],
                       target_params["a0"]]).astype(jnp.float32)   # (2,) -> SMEM

    a_bf = a_hat.astype(jnp.bfloat16)
    x1_p = _pad_last(x1, cin_p).astype(jnp.bfloat16)
    x2_p = _pad_last(x2, cin_p).astype(jnp.bfloat16)

    kernel = partial(fused_cg_kernel, n_nodes=n, num_mask=num_mask)

    def full(shape):
        zeros = (0,) * len(shape)
        return pl.BlockSpec(shape, lambda i, _z=zeros: _z)

    smem_spec = pl.BlockSpec(memory_space=pltpu.MemorySpace.SMEM)

    loss = pl.pallas_call(
        kernel,
        out_shape=jax.ShapeDtypeStruct((1, 1), jnp.float32),
        grid=(1,),
        in_specs=[full(a_bf.shape), full(x1_p.shape), full(x2_p.shape),
                  full(maskv.shape),
                  full(w0.shape), full(b0.shape), full(g0.shape), full(be0.shape),
                  full(w1.shape), full(b1.shape), full(g1.shape), full(be1.shape),
                  smem_spec],
        out_specs=pl.BlockSpec((1, 1), lambda i: (0, 0)),
        compiler_params=pltpu.CompilerParams(
            dimension_semantics=("arbitrary",)),
    )(a_bf, x1_p, x2_p, maskv, w0, b0, g0, be0, w1, b1, g1, be1, alpha)
    return loss[0, 0]


if __name__ == "__main__":
    # small deterministic config: CG(in_dim=32, out_dim=16, p1=0.2, rate=0.5,
    #                                hidden=32, layers=2), N=64 nodes
    N, IN_DIM, HIDDEN, OUT_DIM = 64, 32, 32, 16
    P1, RATE = 0.2, 0.5

    root = jax.random.PRNGKey(0)
    k_feat, k_online, k_target, k_fwd = jax.random.split(root, 4)

    feat = jax.random.normal(k_feat, (N, IN_DIM), jnp.float32)
    a_hat = build_graph(N)

    online_params = make_encoder_params(k_online, IN_DIM, HIDDEN, OUT_DIM)
    target_params = make_encoder_params(k_target, IN_DIM, HIDDEN, OUT_DIM)
    enc_mask_token = jnp.zeros((1, IN_DIM), jnp.float32)

    loss = cg_forward(a_hat, feat, online_params, target_params,
                      enc_mask_token, RATE, P1, k_fwd)
    loss = jax.block_until_ready(loss)
    assert loss.shape == () and jnp.isfinite(loss)
    print("KERNEL_OK")
</pallas_src>

<mosaic_0001>
module attributes {stable_mosaic.version = 11 : i64} {
  func.func @fused_cg_kernel(%arg0: i32, %arg1: memref<64x64xbf16, #tpu.memory_space<vmem>>, %arg2: memref<64x128xbf16, #tpu.memory_space<vmem>>, %arg3: memref<64x128xbf16, #tpu.memory_space<vmem>>, %arg4: memref<64x1xf32, #tpu.memory_space<vmem>>, %arg5: memref<2x128x128xbf16, #tpu.memory_space<vmem>>, %arg6: memref<2x1x128xf32, #tpu.memory_space<vmem>>, %arg7: memref<2x1x128xf32, #tpu.memory_space<vmem>>, %arg8: memref<2x1x128xf32, #tpu.memory_space<vmem>>, %arg9: memref<2x128x128xbf16, #tpu.memory_space<vmem>>, %arg10: memref<2x1x128xf32, #tpu.memory_space<vmem>>, %arg11: memref<2x1x128xf32, #tpu.memory_space<vmem>>, %arg12: memref<2x1x128xf32, #tpu.memory_space<vmem>>, %arg13: memref<2xf32, #tpu.memory_space<smem>>, %arg14: memref<1x1xf32, #tpu.memory_space<vmem>>) attributes {dimension_semantics = [#tpu.dimension_semantics<arbitrary>], iteration_bounds = array<i64: 1>, scalar_prefetch = 0 : i64, scratch_operands = 0 : i64, tpu.core_type = #tpu.core_type<tc>, window_params = [{pipeline_mode = #tpu.pipeline_mode<synchronous>, transform_indices = @transform_0, window_bounds = array<i64: 64, 64>}, {pipeline_mode = #tpu.pipeline_mode<synchronous>, transform_indices = @transform_1, window_bounds = array<i64: 64, 128>}, {pipeline_mode = #tpu.pipeline_mode<synchronous>, transform_indices = @transform_2, window_bounds = array<i64: 64, 128>}, {pipeline_mode = #tpu.pipeline_mode<synchronous>, transform_indices = @transform_3, window_bounds = array<i64: 64, 1>}, {pipeline_mode = #tpu.pipeline_mode<synchronous>, transform_indices = @transform_4, window_bounds = array<i64: 2, 128, 128>}, {pipeline_mode = #tpu.pipeline_mode<synchronous>, transform_indices = @transform_5, window_bounds = array<i64: 2, 1, 128>}, {pipeline_mode = #tpu.pipeline_mode<synchronous>, transform_indices = @transform_6, window_bounds = array<i64: 2, 1, 128>}, {pipeline_mode = #tpu.pipeline_mode<synchronous>, transform_indices = @transform_7, window_bounds = array<i64: 2, 1, 128>}, {pipeline_mode = #tpu.pipeline_mode<synchronous>, transform_indices = @transform_8, window_bounds = array<i64: 2, 128, 128>}, {pipeline_mode = #tpu.pipeline_mode<synchronous>, transform_indices = @transform_9, window_bounds = array<i64: 2, 1, 128>}, {pipeline_mode = #tpu.pipeline_mode<synchronous>, transform_indices = @transform_10, window_bounds = array<i64: 2, 1, 128>}, {pipeline_mode = #tpu.pipeline_mode<synchronous>, transform_indices = @transform_11, window_bounds = array<i64: 2, 1, 128>}, {transform_indices = @transform_12, window_bounds = array<i64: 2>}, {pipeline_mode = #tpu.pipeline_mode<synchronous>, transform_indices = @transform_13, window_bounds = array<i64: 1, 1>}]} {
    %c0 = arith.constant 0 : index
    %c0_0 = arith.constant 0 : index
    %0 = vector.load %arg1[%c0, %c0_0] : memref<64x64xbf16, #tpu.memory_space<vmem>>, vector<64x64xbf16>
    %c0_1 = arith.constant 0 : index
    %c0_2 = arith.constant 0 : index
    %1 = vector.load %arg2[%c0_1, %c0_2] : memref<64x128xbf16, #tpu.memory_space<vmem>>, vector<64x128xbf16>
    %c0_3 = arith.constant 0 : index
    %c0_4 = arith.constant 0 : index
    %c0_5 = arith.constant 0 : index
    %2 = vector.load %arg5[%c0_3, %c0_4, %c0_5] : memref<2x128x128xbf16, #tpu.memory_space<vmem>>, vector<1x128x128xbf16>
    %3 = vector.shape_cast %2 : vector<1x128x128xbf16> to vector<128x128xbf16>
    %cst = arith.constant dense<0.000000e+00> : vector<64x128xf32>
    %4 = tpu.matmul %1, %3, %cst {dimension_numbers = #tpu.dot_dimension_numbers<[1], [0], [0], [1], [0, 0, 1, 1], [], []>} : vector<64x128xbf16>, vector<128x128xbf16>, vector<64x128xf32> -> vector<64x128xf32>
    %5 = arith.truncf %4 : vector<64x128xf32> to vector<64x128xbf16>
    %cst_6 = arith.constant dense<0.000000e+00> : vector<64x128xf32>
    %6 = tpu.matmul %0, %5, %cst_6 {dimension_numbers = #tpu.dot_dimension_numbers<[1], [0], [0], [1], [0, 0, 1, 1], [], []>} : vector<64x64xbf16>, vector<64x128xbf16>, vector<64x128xf32> -> vector<64x128xf32>
    %c0_7 = arith.constant 0 : index
    %c0_8 = arith.constant 0 : index
    %c0_9 = arith.constant 0 : index
    %7 = vector.load %arg6[%c0_7, %c0_8, %c0_9] : memref<2x1x128xf32, #tpu.memory_space<vmem>>, vector<1x1x128xf32>
    %8 = vector.shape_cast %7 : vector<1x1x128xf32> to vector<1x128xf32>
    %9 = vector.broadcast %8 : vector<1x128xf32> to vector<64x128xf32>
    %10 = arith.addf %6, %9 : vector<64x128xf32>
    %c0_10 = arith.constant 0 : index
    %c0_11 = arith.constant 0 : index
    %c0_12 = arith.constant 0 : index
    %11 = vector.load %arg7[%c0_10, %c0_11, %c0_12] : memref<2x1x128xf32, #tpu.memory_space<vmem>>, vector<1x1x128xf32>
    %12 = vector.shape_cast %11 : vector<1x1x128xf32> to vector<1x128xf32>
    %c0_13 = arith.constant 0 : index
    %c0_14 = arith.constant 0 : index
    %c0_15 = arith.constant 0 : index
    %13 = vector.load %arg8[%c0_13, %c0_14, %c0_15] : memref<2x1x128xf32, #tpu.memory_space<vmem>>, vector<1x1x128xf32>
    %14 = vector.shape_cast %13 : vector<1x1x128xf32> to vector<1x128xf32>
    %cst_16 = arith.constant dense<0.000000e+00> : vector<128xf32>
    %15 = vector.multi_reduction <add>, %10, %cst_16 [0] : vector<64x128xf32> to vector<128xf32>
    %16 = vector.shape_cast %15 : vector<128xf32> to vector<1x128xf32>
    %cst_17 = arith.constant 1.562500e-02 : f32
    %17 = vector.broadcast %cst_17 : f32 to vector<1x128xf32>
    %18 = arith.mulf %16, %17 : vector<1x128xf32>
    %19 = vector.broadcast %18 : vector<1x128xf32> to vector<64x128xf32>
    %20 = arith.subf %10, %19 : vector<64x128xf32>
    %21 = arith.mulf %20, %20 : vector<64x128xf32>
    %cst_18 = arith.constant dense<0.000000e+00> : vector<128xf32>
    %22 = vector.multi_reduction <add>, %21, %cst_18 [0] : vector<64x128xf32> to vector<128xf32>
    %23 = vector.shape_cast %22 : vector<128xf32> to vector<1x128xf32>
    %cst_19 = arith.constant 1.562500e-02 : f32
    %24 = vector.broadcast %cst_19 : f32 to vector<1x128xf32>
    %25 = arith.mulf %23, %24 : vector<1x128xf32>
    %cst_20 = arith.constant 9.99999974E-6 : f32
    %26 = vector.broadcast %cst_20 : f32 to vector<1x128xf32>
    %27 = arith.addf %25, %26 : vector<1x128xf32>
    %28 = math.rsqrt %27 : vector<1x128xf32>
    %29 = vector.broadcast %28 : vector<1x128xf32> to vector<64x128xf32>
    %30 = arith.mulf %20, %29 : vector<64x128xf32>
    %31 = vector.broadcast %12 : vector<1x128xf32> to vector<64x128xf32>
    %32 = arith.mulf %30, %31 : vector<64x128xf32>
    %33 = vector.broadcast %14 : vector<1x128xf32> to vector<64x128xf32>
    %34 = arith.addf %32, %33 : vector<64x128xf32>
    %cst_21 = arith.constant 0.000000e+00 : f32
    %35 = vector.broadcast %cst_21 : f32 to vector<64x128xf32>
    %36 = arith.cmpf oge, %34, %35 : vector<64x128xf32>
    %c0_22 = arith.constant 0 : index
    %37 = memref.load %arg13[%c0_22] : memref<2xf32, #tpu.memory_space<smem>>
    %38 = vector.broadcast %37 : f32 to vector<64x128xf32>
    %39 = arith.mulf %38, %34 : vector<64x128xf32>
    %40 = arith.select %36, %34, %39 : vector<64x128xi1>, vector<64x128xf32>
    %41 = arith.truncf %40 : vector<64x128xf32> to vector<64x128xbf16>
    %c0_23 = arith.constant 0 : index
    %c0_24 = arith.constant 0 : index
    %c0_25 = arith.constant 0 : index
    %42 = vector.load %arg9[%c0_23, %c0_24, %c0_25] : memref<2x128x128xbf16, #tpu.memory_space<vmem>>, vector<1x128x128xbf16>
    %43 = vector.shape_cast %42 : vector<1x128x128xbf16> to vector<128x128xbf16>
    %cst_26 = arith.constant dense<0.000000e+00> : vector<64x128xf32>
    %44 = tpu.matmul %41, %43, %cst_26 {dimension_numbers = #tpu.dot_dimension_numbers<[1], [0], [0], [1], [0, 0, 1, 1], [], []>} : vector<64x128xbf16>, vector<128x128xbf16>, vector<64x128xf32> -> vector<64x128xf32>
    %45 = arith.truncf %44 : vector<64x128xf32> to vector<64x128xbf16>
    %cst_27 = arith.constant dense<0.000000e+00> : vector<64x128xf32>
    %46 = tpu.matmul %0, %45, %cst_27 {dimension_numbers = #tpu.dot_dimension_numbers<[1], [0], [0], [1], [0, 0, 1, 1], [], []>} : vector<64x64xbf16>, vector<64x128xbf16>, vector<64x128xf32> -> vector<64x128xf32>
    %c0_28 = arith.constant 0 : index
    %c0_29 = arith.constant 0 : index
    %c0_30 = arith.constant 0 : index
    %47 = vector.load %arg10[%c0_28, %c0_29, %c0_30] : memref<2x1x128xf32, #tpu.memory_space<vmem>>, vector<1x1x128xf32>
    %48 = vector.shape_cast %47 : vector<1x1x128xf32> to vector<1x128xf32>
    %49 = vector.broadcast %48 : vector<1x128xf32> to vector<64x128xf32>
    %50 = arith.addf %46, %49 : vector<64x128xf32>
    %c0_31 = arith.constant 0 : index
    %c0_32 = arith.constant 0 : index
    %c0_33 = arith.constant 0 : index
    %51 = vector.load %arg11[%c0_31, %c0_32, %c0_33] : memref<2x1x128xf32, #tpu.memory_space<vmem>>, vector<1x1x128xf32>
    %52 = vector.shape_cast %51 : vector<1x1x128xf32> to vector<1x128xf32>
    %c0_34 = arith.constant 0 : index
    %c0_35 = arith.constant 0 : index
    %c0_36 = arith.constant 0 : index
    %53 = vector.load %arg12[%c0_34, %c0_35, %c0_36] : memref<2x1x128xf32, #tpu.memory_space<vmem>>, vector<1x1x128xf32>
    %54 = vector.shape_cast %53 : vector<1x1x128xf32> to vector<1x128xf32>
    %cst_37 = arith.constant dense<0.000000e+00> : vector<128xf32>
    %55 = vector.multi_reduction <add>, %50, %cst_37 [0] : vector<64x128xf32> to vector<128xf32>
    %56 = vector.shape_cast %55 : vector<128xf32> to vector<1x128xf32>
    %cst_38 = arith.constant 1.562500e-02 : f32
    %57 = vector.broadcast %cst_38 : f32 to vector<1x128xf32>
    %58 = arith.mulf %56, %57 : vector<1x128xf32>
    %59 = vector.broadcast %58 : vector<1x128xf32> to vector<64x128xf32>
    %60 = arith.subf %50, %59 : vector<64x128xf32>
    %61 = arith.mulf %60, %60 : vector<64x128xf32>
    %cst_39 = arith.constant dense<0.000000e+00> : vector<128xf32>
    %62 = vector.multi_reduction <add>, %61, %cst_39 [0] : vector<64x128xf32> to vector<128xf32>
    %63 = vector.shape_cast %62 : vector<128xf32> to vector<1x128xf32>
    %cst_40 = arith.constant 1.562500e-02 : f32
    %64 = vector.broadcast %cst_40 : f32 to vector<1x128xf32>
    %65 = arith.mulf %63, %64 : vector<1x128xf32>
    %cst_41 = arith.constant 9.99999974E-6 : f32
    %66 = vector.broadcast %cst_41 : f32 to vector<1x128xf32>
    %67 = arith.addf %65, %66 : vector<1x128xf32>
    %68 = math.rsqrt %67 : vector<1x128xf32>
    %69 = vector.broadcast %68 : vector<1x128xf32> to vector<64x128xf32>
    %70 = arith.mulf %60, %69 : vector<64x128xf32>
    %71 = vector.broadcast %52 : vector<1x128xf32> to vector<64x128xf32>
    %72 = arith.mulf %70, %71 : vector<64x128xf32>
    %73 = vector.broadcast %54 : vector<1x128xf32> to vector<64x128xf32>
    %74 = arith.addf %72, %73 : vector<64x128xf32>
    %c0_42 = arith.constant 0 : index
    %c0_43 = arith.constant 0 : index
    %75 = vector.load %arg3[%c0_42, %c0_43] : memref<64x128xbf16, #tpu.memory_space<vmem>>, vector<64x128xbf16>
    %c1 = arith.constant 1 : index
    %c0_44 = arith.constant 0 : index
    %c0_45 = arith.constant 0 : index
    %76 = vector.load %arg5[%c1, %c0_44, %c0_45] : memref<2x128x128xbf16, #tpu.memory_space<vmem>>, vector<1x128x128xbf16>
    %77 = vector.shape_cast %76 : vector<1x128x128xbf16> to vector<128x128xbf16>
    %cst_46 = arith.constant dense<0.000000e+00> : vector<64x128xf32>
    %78 = tpu.matmul %75, %77, %cst_46 {dimension_numbers = #tpu.dot_dimension_numbers<[1], [0], [0], [1], [0, 0, 1, 1], [], []>} : vector<64x128xbf16>, vector<128x128xbf16>, vector<64x128xf32> -> vector<64x128xf32>
    %79 = arith.truncf %78 : vector<64x128xf32> to vector<64x128xbf16>
    %cst_47 = arith.constant dense<0.000000e+00> : vector<64x128xf32>
    %80 = tpu.matmul %0, %79, %cst_47 {dimension_numbers = #tpu.dot_dimension_numbers<[1], [0], [0], [1], [0, 0, 1, 1], [], []>} : vector<64x64xbf16>, vector<64x128xbf16>, vector<64x128xf32> -> vector<64x128xf32>
    %c1_48 = arith.constant 1 : index
    %c0_49 = arith.constant 0 : index
    %c0_50 = arith.constant 0 : index
    %81 = vector.load %arg6[%c1_48, %c0_49, %c0_50] : memref<2x1x128xf32, #tpu.memory_space<vmem>>, vector<1x1x128xf32>
    %82 = vector.shape_cast %81 : vector<1x1x128xf32> to vector<1x128xf32>
    %83 = vector.broadcast %82 : vector<1x128xf32> to vector<64x128xf32>
    %84 = arith.addf %80, %83 : vector<64x128xf32>
    %c1_51 = arith.constant 1 : index
    %c0_52 = arith.constant 0 : index
    %c0_53 = arith.constant 0 : index
    %85 = vector.load %arg7[%c1_51, %c0_52, %c0_53] : memref<2x1x128xf32, #tpu.memory_space<vmem>>, vector<1x1x128xf32>
    %86 = vector.shape_cast %85 : vector<1x1x128xf32> to vector<1x128xf32>
    %c1_54 = arith.constant 1 : index
    %c0_55 = arith.constant 0 : index
    %c0_56 = arith.constant 0 : index
    %87 = vector.load %arg8[%c1_54, %c0_55, %c0_56] : memref<2x1x128xf32, #tpu.memory_space<vmem>>, vector<1x1x128xf32>
    %88 = vector.shape_cast %87 : vector<1x1x128xf32> to vector<1x128xf32>
    %cst_57 = arith.constant dense<0.000000e+00> : vector<128xf32>
    %89 = vector.multi_reduction <add>, %84, %cst_57 [0] : vector<64x128xf32> to vector<128xf32>
    %90 = vector.shape_cast %89 : vector<128xf32> to vector<1x128xf32>
    %cst_58 = arith.constant 1.562500e-02 : f32
    %91 = vector.broadcast %cst_58 : f32 to vector<1x128xf32>
    %92 = arith.mulf %90, %91 : vector<1x128xf32>
    %93 = vector.broadcast %92 : vector<1x128xf32> to vector<64x128xf32>
    %94 = arith.subf %84, %93 : vector<64x128xf32>
    %95 = arith.mulf %94, %94 : vector<64x128xf32>
    %cst_59 = arith.constant dense<0.000000e+00> : vector<128xf32>
    %96 = vector.multi_reduction <add>, %95, %cst_59 [0] : vector<64x128xf32> to vector<128xf32>
    %97 = vector.shape_cast %96 : vector<128xf32> to vector<1x128xf32>
    %cst_60 = arith.constant 1.562500e-02 : f32
    %98 = vector.broadcast %cst_60 : f32 to vector<1x128xf32>
    %99 = arith.mulf %97, %98 : vector<1x128xf32>
    %cst_61 = arith.constant 9.99999974E-6 : f32
    %100 = vector.broadcast %cst_61 : f32 to vector<1x128xf32>
    %101 = arith.addf %99, %100 : vector<1x128xf32>
    %102 = math.rsqrt %101 : vector<1x128xf32>
    %103 = vector.broadcast %102 : vector<1x128xf32> to vector<64x128xf32>
    %104 = arith.mulf %94, %103 : vector<64x128xf32>
    %105 = vector.broadcast %86 : vector<1x128xf32> to vector<64x128xf32>
    %106 = arith.mulf %104, %105 : vector<64x128xf32>
    %107 = vector.broadcast %88 : vector<1x128xf32> to vector<64x128xf32>
    %108 = arith.addf %106, %107 : vector<64x128xf32>
    %cst_62 = arith.constant 0.000000e+00 : f32
    %109 = vector.broadcast %cst_62 : f32 to vector<64x128xf32>
    %110 = arith.cmpf oge, %108, %109 : vector<64x128xf32>
    %c1_63 = arith.constant 1 : index
    %111 = memref.load %arg13[%c1_63] : memref<2xf32, #tpu.memory_space<smem>>
    %112 = vector.broadcast %111 : f32 to vector<64x128xf32>
    %113 = arith.mulf %112, %108 : vector<64x128xf32>
    %114 = arith.select %110, %108, %113 : vector<64x128xi1>, vector<64x128xf32>
    %115 = arith.truncf %114 : vector<64x128xf32> to vector<64x128xbf16>
    %c1_64 = arith.constant 1 : index
    %c0_65 = arith.constant 0 : index
    %c0_66 = arith.constant 0 : index
    %116 = vector.load %arg9[%c1_64, %c0_65, %c0_66] : memref<2x128x128xbf16, #tpu.memory_space<vmem>>, vector<1x128x128xbf16>
    %117 = vector.shape_cast %116 : vector<1x128x128xbf16> to vector<128x128xbf16>
    %cst_67 = arith.constant dense<0.000000e+00> : vector<64x128xf32>
    %118 = tpu.matmul %115, %117, %cst_67 {dimension_numbers = #tpu.dot_dimension_numbers<[1], [0], [0], [1], [0, 0, 1, 1], [], []>} : vector<64x128xbf16>, vector<128x128xbf16>, vector<64x128xf32> -> vector<64x128xf32>
    %119 = arith.truncf %118 : vector<64x128xf32> to vector<64x128xbf16>
    %cst_68 = arith.constant dense<0.000000e+00> : vector<64x128xf32>
    %120 = tpu.matmul %0, %119, %cst_68 {dimension_numbers = #tpu.dot_dimension_numbers<[1], [0], [0], [1], [0, 0, 1, 1], [], []>} : vector<64x64xbf16>, vector<64x128xbf16>, vector<64x128xf32> -> vector<64x128xf32>
    %c1_69 = arith.constant 1 : index
    %c0_70 = arith.constant 0 : index
    %c0_71 = arith.constant 0 : index
    %121 = vector.load %arg10[%c1_69, %c0_70, %c0_71] : memref<2x1x128xf32, #tpu.memory_space<vmem>>, vector<1x1x128xf32>
    %122 = vector.shape_cast %121 : vector<1x1x128xf32> to vector<1x128xf32>
    %123 = vector.broadcast %122 : vector<1x128xf32> to vector<64x128xf32>
    %124 = arith.addf %120, %123 : vector<64x128xf32>
    %c1_72 = arith.constant 1 : index
    %c0_73 = arith.constant 0 : index
    %c0_74 = arith.constant 0 : index
    %125 = vector.load %arg11[%c1_72, %c0_73, %c0_74] : memref<2x1x128xf32, #tpu.memory_space<vmem>>, vector<1x1x128xf32>
    %126 = vector.shape_cast %125 : vector<1x1x128xf32> to vector<1x128xf32>
    %c1_75 = arith.constant 1 : index
    %c0_76 = arith.constant 0 : index
    %c0_77 = arith.constant 0 : index
    %127 = vector.load %arg12[%c1_75, %c0_76, %c0_77] : memref<2x1x128xf32, #tpu.memory_space<vmem>>, vector<1x1x128xf32>
    %128 = vector.shape_cast %127 : vector<1x1x128xf32> to vector<1x128xf32>
    %cst_78 = arith.constant dense<0.000000e+00> : vector<128xf32>
    %129 = vector.multi_reduction <add>, %124, %cst_78 [0] : vector<64x128xf32> to vector<128xf32>
    %130 = vector.shape_cast %129 : vector<128xf32> to vector<1x128xf32>
    %cst_79 = arith.constant 1.562500e-02 : f32
    %131 = vector.broadcast %cst_79 : f32 to vector<1x128xf32>
    %132 = arith.mulf %130, %131 : vector<1x128xf32>
    %133 = vector.broadcast %132 : vector<1x128xf32> to vector<64x128xf32>
    %134 = arith.subf %124, %133 : vector<64x128xf32>
    %135 = arith.mulf %134, %134 : vector<64x128xf32>
    %cst_80 = arith.constant dense<0.000000e+00> : vector<128xf32>
    %136 = vector.multi_reduction <add>, %135, %cst_80 [0] : vector<64x128xf32> to vector<128xf32>
    %137 = vector.shape_cast %136 : vector<128xf32> to vector<1x128xf32>
    %cst_81 = arith.constant 1.562500e-02 : f32
    %138 = vector.broadcast %cst_81 : f32 to vector<1x128xf32>
    %139 = arith.mulf %137, %138 : vector<1x128xf32>
    %cst_82 = arith.constant 9.99999974E-6 : f32
    %140 = vector.broadcast %cst_82 : f32 to vector<1x128xf32>
    %141 = arith.addf %139, %140 : vector<1x128xf32>
    %142 = math.rsqrt %141 : vector<1x128xf32>
    %143 = vector.broadcast %142 : vector<1x128xf32> to vector<64x128xf32>
    %144 = arith.mulf %134, %143 : vector<64x128xf32>
    %145 = vector.broadcast %126 : vector<1x128xf32> to vector<64x128xf32>
    %146 = arith.mulf %144, %145 : vector<64x128xf32>
    %147 = vector.broadcast %128 : vector<1x128xf32> to vector<64x128xf32>
    %148 = arith.addf %146, %147 : vector<64x128xf32>
    %149 = arith.mulf %74, %74 : vector<64x128xf32>
    %cst_83 = arith.constant dense<0.000000e+00> : vector<64xf32>
    %150 = vector.multi_reduction <add>, %149, %cst_83 [1] : vector<64x128xf32> to vector<64xf32>
    %151 = vector.shape_cast %150 : vector<64xf32> to vector<64x1xf32>
    %152 = arith.mulf %148, %148 : vector<64x128xf32>
    %cst_84 = arith.constant dense<0.000000e+00> : vector<64xf32>
    %153 = vector.multi_reduction <add>, %152, %cst_84 [1] : vector<64x128xf32> to vector<64xf32>
    %154 = vector.shape_cast %153 : vector<64xf32> to vector<64x1xf32>
    %155 = arith.mulf %74, %148 : vector<64x128xf32>
    %cst_85 = arith.constant dense<0.000000e+00> : vector<64xf32>
    %156 = vector.multi_reduction <add>, %155, %cst_85 [1] : vector<64x128xf32> to vector<64xf32>
    %157 = vector.shape_cast %156 : vector<64xf32> to vector<64x1xf32>
    %cst_86 = arith.constant 1.000000e-24 : f32
    %158 = vector.broadcast %cst_86 : f32 to vector<64x1xf32>
    %159 = arith.maximumf %151, %158 : vector<64x1xf32>
    %160 = math.rsqrt %159 : vector<64x1xf32>
    %161 = arith.mulf %157, %160 : vector<64x1xf32>
    %cst_87 = arith.constant 1.000000e-24 : f32
    %162 = vector.broadcast %cst_87 : f32 to vector<64x1xf32>
    %163 = arith.maximumf %154, %162 : vector<64x1xf32>
    %164 = math.rsqrt %163 : vector<64x1xf32>
    %165 = arith.mulf %161, %164 : vector<64x1xf32>
    %cst_88 = arith.constant 1.000000e+00 : f32
    %166 = vector.broadcast %cst_88 : f32 to vector<64x1xf32>
    %167 = arith.subf %166, %165 : vector<64x1xf32>
    %c0_89 = arith.constant 0 : index
    %c0_90 = arith.constant 0 : index
    %168 = vector.load %arg4[%c0_89, %c0_90] : memref<64x1xf32, #tpu.memory_space<vmem>>, vector<64x1xf32>
    %169 = arith.mulf %167, %168 : vector<64x1xf32>
    %cst_91 = arith.constant dense<0.000000e+00> : vector<1xf32>
    %170 = vector.multi_reduction <add>, %169, %cst_91 [0] : vector<64x1xf32> to vector<1xf32>
    %171 = vector.shape_cast %170 : vector<1xf32> to vector<1x1xf32>
    %cst_92 = arith.constant 3.125000e-02 : f32
    %172 = vector.broadcast %cst_92 : f32 to vector<1x1xf32>
    %173 = arith.mulf %171, %172 : vector<1x1xf32>
    %c0_93 = arith.constant 0 : index
    %c0_94 = arith.constant 0 : index
    %174 = vector.load %arg14[%c0_93, %c0_94] : memref<1x1xf32, #tpu.memory_space<vmem>>, vector<1x1xf32>
    tpu.vector_store %arg14[%c0_93, %c0_94], %173 {strides = array<i32>} : memref<1x1xf32, #tpu.memory_space<vmem>>, vector<1x1xf32>,
    return
  }
  func.func @transform_0(%arg0: i32) -> (i32, i32) {
    %c0_i32 = arith.constant 0 : i32
    %c0_i32_0 = arith.constant 0 : i32
    %c0_i32_1 = arith.constant 0 : i32
    return %c0_i32, %c0_i32_0 : i32, i32
  }
  func.func @transform_1(%arg0: i32) -> (i32, i32) {
    %c0_i32 = arith.constant 0 : i32
    %c0_i32_0 = arith.constant 0 : i32
    %c0_i32_1 = arith.constant 0 : i32
    return %c0_i32, %c0_i32_0 : i32, i32
  }
  func.func @transform_2(%arg0: i32) -> (i32, i32) {
    %c0_i32 = arith.constant 0 : i32
    %c0_i32_0 = arith.constant 0 : i32
    %c0_i32_1 = arith.constant 0 : i32
    return %c0_i32, %c0_i32_0 : i32, i32
  }
  func.func @transform_3(%arg0: i32) -> (i32, i32) {
    %c0_i32 = arith.constant 0 : i32
    %c0_i32_0 = arith.constant 0 : i32
    %c0_i32_1 = arith.constant 0 : i32
    return %c0_i32, %c0_i32_0 : i32, i32
  }
  func.func @transform_4(%arg0: i32) -> (i32, i32, i32) {
    %c0_i32 = arith.constant 0 : i32
    %c0_i32_0 = arith.constant 0 : i32
    %c0_i32_1 = arith.constant 0 : i32
    %c0_i32_2 = arith.constant 0 : i32
    return %c0_i32, %c0_i32_0, %c0_i32_1 : i32, i32, i32
  }
  func.func @transform_5(%arg0: i32) -> (i32, i32, i32) {
    %c0_i32 = arith.constant 0 : i32
    %c0_i32_0 = arith.constant 0 : i32
    %c0_i32_1 = arith.constant 0 : i32
    %c0_i32_2 = arith.constant 0 : i32
    return %c0_i32, %c0_i32_0, %c0_i32_1 : i32, i32, i32
  }
  func.func @transform_6(%arg0: i32) -> (i32, i32, i32) {
    %c0_i32 = arith.constant 0 : i32
    %c0_i32_0 = arith.constant 0 : i32
    %c0_i32_1 = arith.constant 0 : i32
    %c0_i32_2 = arith.constant 0 : i32
    return %c0_i32, %c0_i32_0, %c0_i32_1 : i32, i32, i32
  }
  func.func @transform_7(%arg0: i32) -> (i32, i32, i32) {
    %c0_i32 = arith.constant 0 : i32
    %c0_i32_0 = arith.constant 0 : i32
    %c0_i32_1 = arith.constant 0 : i32
    %c0_i32_2 = arith.constant 0 : i32
    return %c0_i32, %c0_i32_0, %c0_i32_1 : i32, i32, i32
  }
  func.func @transform_8(%arg0: i32) -> (i32, i32, i32) {
    %c0_i32 = arith.constant 0 : i32
    %c0_i32_0 = arith.constant 0 : i32
    %c0_i32_1 = arith.constant 0 : i32
    %c0_i32_2 = arith.constant 0 : i32
    return %c0_i32, %c0_i32_0, %c0_i32_1 : i32, i32, i32
  }
  func.func @transform_9(%arg0: i32) -> (i32, i32, i32) {
    %c0_i32 = arith.constant 0 : i32
    %c0_i32_0 = arith.constant 0 : i32
    %c0_i32_1 = arith.constant 0 : i32
    %c0_i32_2 = arith.constant 0 : i32
    return %c0_i32, %c0_i32_0, %c0_i32_1 : i32, i32, i32
  }
  func.func @transform_10(%arg0: i32) -> (i32, i32, i32) {
    %c0_i32 = arith.constant 0 : i32
    %c0_i32_0 = arith.constant 0 : i32
    %c0_i32_1 = arith.constant 0 : i32
    %c0_i32_2 = arith.constant 0 : i32
    return %c0_i32, %c0_i32_0, %c0_i32_1 : i32, i32, i32
  }
  func.func @transform_11(%arg0: i32) -> (i32, i32, i32) {
    %c0_i32 = arith.constant 0 : i32
    %c0_i32_0 = arith.constant 0 : i32
    %c0_i32_1 = arith.constant 0 : i32
    %c0_i32_2 = arith.constant 0 : i32
    return %c0_i32, %c0_i32_0, %c0_i32_1 : i32, i32, i32
  }
  func.func @transform_12(%arg0: i32) -> i32 {
    %c0_i32 = arith.constant 0 : i32
    %c0_i32_0 = arith.constant 0 : i32
    return %c0_i32 : i32
  }
  func.func @transform_13(%arg0: i32) -> (i32, i32) {
    %c0_i32 = arith.constant 0 : i32
    %c0_i32_0 = arith.constant 0 : i32
    %c0_i32_1 = arith.constant 0 : i32
    return %c0_i32, %c0_i32_0 : i32, i32
  }
}

</mosaic_0001>

<bundles_post_ra>
// kernel: tpu_custom_call.1
= control target key start
LH: loop header
LB: loop body
LE: loop exit
PB: predicated region body
PF: predicated region fallthrough
CT: control target
= control target key end

     0   :  { %18 = vsyncpa [#allocation3], 0  ;;  %s2699_s0 = inlined_call_operand.vmem [shape: bf16[64,64], index: 0, kind: input, shape index: {}]   ;;  %s2700_s1 = inlined_call_operand.vmem [shape: bf16[64,128], index: 1, kind: input, shape index: {}]   ;;  %s2701_s2 = inlined_call_operand.hbm [shape: bf16[64,128], index: 2, kind: input, shape index: {}]   ;;  %s2702_s3 = inlined_call_operand.vmem [shape: f32[64,1], index: 3, kind: input, shape index: {}]   ;;  %s2703_s4 = inlined_call_operand.hbm [shape: bf16[2,128,128], index: 4, kind: input, shape index: {}]   ;;  %s2704_s5 = inlined_call_operand.vmem [shape: f32[2,1,128], index: 5, kind: input, shape index: {}]   ;;  %s2705_s6 = inlined_call_operand.vmem [shape: f32[2,1,128], index: 6, kind: input, shape index: {}]   ;;  %s2706_s7 = inlined_call_operand.hbm [shape: f32[2,1,128], index: 7, kind: input, shape index: {}]   ;;  %s2707_s8 = inlined_call_operand.hbm [shape: bf16[2,128,128], index: 8, kind: input, shape index: {}]   ;;  %s2708_s9 = inlined_call_operand.vmem [shape: f32[2,1,128], index: 9, kind: input, shape index: {}]   ;;  %s2709_s10 = inlined_call_operand.vmem [shape: f32[2,1,128], index: 10, kind: input, shape index: {}]   ;;  %s2710_s11 = inlined_call_operand.hbm [shape: f32[2,1,128], index: 11, kind: input, shape index: {}]   ;;  %s2711_s12 = inlined_call_operand.vmem [shape: f32[2], index: 12, kind: input, shape index: {}]   ;;  %s2712_s13 = inlined_call_operand.hbm [shape: f32[1,1], index: 13, kind: output, shape index: {}]  }
   0x1   :  { %19 = vsyncpa [#allocation7], 0 }
   0x2   :  { %20 = vsyncpa [#allocation10], 0 }
   0x3   :  { %21 = vsyncpa [#allocation5], 0 }
   0x4   :  { %22 = vsyncpa [#allocation4], 0  ;;  %s46_s27 = sshll.u32 %s2703_s4, 4  ;;  %s1981_s28 = smov [#allocation6]   ;;  %s47_s27 = int_to_ptr.hbm [resolvable:$true] %s46_s27 }
   0x5   :  { %s48_s29 = sshll.u32 %s1981_s28, 4  ;;  %s76_s15 = sshll.u32 %s2707_s8, 4  ;;  %s49_s29 = int_to_ptr.vmem [resolvable:$true] %s48_s29  ;;  %s77_s15 = int_to_ptr.hbm [resolvable:$true] %s76_s15 }
   0x6   :  { %s1982_s16 = smov 64   ;;  %s1983_s17 = smov 4  }
   0x7   :  { %54 = dma.hbm_to_vmem [thread:$0]  %s47_s27, 2048, %s49_s29, [#allocation7], %s1982_s16, %s1982_s16, %s1983_s17  }
   0x8   :  { %s1984_s18 = smov [#allocation9]   ;;  %s31_s22 = sshll.u32 %s2701_s2, 4  ;;  %s32_s22 = int_to_ptr.hbm [resolvable:$true] %s31_s22 }
   0x9   :  { %s78_s19 = sshll.u32 %s1984_s18, 4  ;;  %s63_s24 = sshll.u32 %s2706_s7, 4  ;;  %s79_s19 = int_to_ptr.vmem [resolvable:$true] %s78_s19  ;;  %s64_s24 = int_to_ptr.hbm [resolvable:$true] %s63_s24 }
   0xa   :  { %84 = dma.hbm_to_vmem [thread:$0]  %s77_s15, 2048, %s79_s19, [#allocation10], %s1982_s16, %s1982_s16, %s1983_s17  }
   0xb   :  { %s1985_s25 = smov [#allocation2]   ;;  %s1986_s8 = smov [#allocation8]  }
   0xc   :  { %s33_s26 = sshll.u32 %s1985_s25, 4  ;;  %s65_s27 = sshll.u32 %s1986_s8, 4  ;;  %s34_s26 = int_to_ptr.vmem [resolvable:$true] %s33_s26  ;;  %s66_s27 = int_to_ptr.vmem [resolvable:$true] %s65_s27 }
   0xd   :  { %39 = dma.hbm_to_vmem [thread:$0]  %s32_s22, 512, %s34_s26, [#allocation3], %s1982_s16, %s1982_s16, %s1983_s17  }
   0xe   :  { %s1987_s28 = smov 16   ;;  %s1988_s29 = smov 1  }
   0xf   :  { %71 = dma.hbm_to_vmem [thread:$0]  %s64_s24, 32, %s66_s27, [#allocation7], %s1987_s28, %s1987_s28, %s1988_s29  }
  0x10   :  { %s93_s14 = sshll.u32 %s2710_s11, 4  ;;  %s1989_s15 = smov [#allocation11]   ;;  %s94_s14 = int_to_ptr.hbm [resolvable:$true] %s93_s14 }
  0x11   :  { %s95_s18 = sshll.u32 %s1989_s15, 4  ;;  %s107_s20 = sshll.u32 %s2711_s12, 4  ;;  %s96_s18 = int_to_ptr.vmem [resolvable:$true] %s95_s18  ;;  %s108_s20 = int_to_ptr.vmem [resolvable:$true] %s107_s20 }
  0x12   :  { %101 = dma.hbm_to_vmem [thread:$0]  %s94_s14, 32, %s96_s18, [#allocation10], %s1987_s28, %s1987_s28, %s1988_s29  }
  0x13   :  { %s1990_s16 = smov [#allocation12]  }
  0x14   :  { %110 = dma.vmem_to_smem %s108_s20, 16, %s1990_s16, [#allocation5]  }
  0x15   :  { %1971 = dma.done.wait [#allocation3], 512  }
  0x16   :  { %1972 = vsyncadd [#allocation3], 4294966784 }
  0x17   :  { %1973 = dma.done.wait [#allocation7], 2080  }
  0x18   :  { %1974 = vsyncadd [#allocation7], 4294965216 }
  0x19   :  { %1975 = dma.done.wait [#allocation10], 2080  }
  0x1a   :  { %1976 = vsyncadd [#allocation10], 4294965216 }
  0x1b   :  { %1977 = dma.done.wait [#allocation5], 16  }
  0x1c   :  { %1978 = vsyncadd [#allocation5], 4294967280 }
  0x1d   :  { %135 = sfence }
  0x1e   :  { %v1723_v0 = vld [vmem:[#allocation6 + $0x38] sm:$0xff]  ;;  %v1722_v1 = vld [vmem:[#allocation6 + $0x30] sm:$0xff]  ;;  %v1721_v2 = vld [vmem:[#allocation6 + $0x28] sm:$0xff]  ;;  %vm298_vm0 = vcmask 523264   ;;  %s1669_s12 = sld [smem:[#allocation12 + $0x1]]  ;;  %s1991_s7 = smov [#allocation13]  }
  0x1f   :  { %241 = vmatpush.bf16.msra.mxu0 %v1723_v0  ;;  %v1720_v3 = vld [vmem:[#allocation6 + $0x20] sm:$0xff]  ;;  %v1719_v4 = vld [vmem:[#allocation6 + $0x18] sm:$0xff]  ;;  %v1718_v5 = vld [vmem:[#allocation6 + $0x10] sm:$0xff]  ;;  %s1496_s19 = sshll.u32 %s1991_s7, 4  ;;  %s1497_s19 = int_to_ptr.vmem [resolvable:$true] %s1496_s19 }
  0x20   :  { %v1717_v6 = vld [vmem:[#allocation6 + $0x8] sm:$0xff]  ;;  %v1716_v7 = vld [vmem:[#allocation6] sm:$0xff]  ;;  %v1714_v10 = vld [vmem:[%s2700_s1 + $0x10] sm:$0xff] }
  0x21   :  { %v1712_v8 = vld [vmem:[%s2700_s1] sm:$0xff]  ;;  %v1713_v9 = vld [vmem:[%s2700_s1 + $0x8] sm:$0xff]  ;;  %v1715_v11 = vld [vmem:[%s2700_s1 + $0x18] sm:$0xff] }
  0x22   :  { %v2095_v24 = vld [vmem:[%s2699_s0] sm:$0xff]  ;;  %v2102_v25 = vld [vmem:[%s2699_s0 + $0x8] sm:$0xff]  ;;  %v2109_v26 = vld [vmem:[%s2699_s0 + $0x10] sm:$0xff] }
  0x23   :  { %242 = vmatpush.bf16.msra.mxu0 %v1722_v1  ;;  %v2116_v27 = vld [vmem:[%s2699_s0 + $0x18] sm:$0xff]  ;;  %v1763_v34 = vld [vmem:[%s2704_s5] ss:$0 sm:$0xff]  ;;  %s435_s0 = sld [smem:[#allocation12]] }
  0x24   :  { %v1731_v59 = vld [vmem:[#allocation9 + $0x38] sm:$0xff] }
  0x25   :  { %521 = vmatpush.bf16.msra.mxu2 %v1731_v59 }
  0x27   :  { %243 = vmatpush.bf16.msra.mxu0 %v1721_v2  ;;  %v1730_v2 = vld [vmem:[#allocation9 + $0x30] sm:$0xff] }
  0x29   :  { %522 = vmatpush.bf16.msra.mxu2 %v1730_v2 }
  0x2b   :  { %244 = vmatpush.bf16.msra.mxu0 %v1720_v3 }
  0x2f   :  { %245 = vmatpush.bf16.msra.mxu0 %v1719_v4 }
  0x33   :  { %246 = vmatpush.bf16.msra.mxu0 %v1718_v5 }
  0x37   :  { %247 = vmatpush.bf16.msra.mxu0 %v1717_v6 }
  0x3b   :  { %248 = vmatpush.bf16.msra.mxu0 %v1716_v7 }
  0x3e   :  { %249 = vmatmul.bf16.vlgmr.msra.gmra.mxu0 %v1712_v8 }
  0x4e   :  { %254 = vmatmul.bf16.gmra.mxu0 %v1713_v9  ;;  %v1729_v9 = vld [vmem:[#allocation9 + $0x28] sm:$0xff] }
  0x4f   :  { %523 = vmatpush.bf16.msra.mxu2 %v1729_v9 }
  0x5e   :  { %259 = vmatmul.bf16.gmra.mxu0 %v1714_v10 }
  0x6e   :  { %264 = vmatmul.bf16.gmra.mxu0 %v1715_v11 }
  0xbb   :  { %v250_v12 = vpop.f32.mrf.mxu0 }
  0xc3   :  { %v252_v13 = vpop.f32.mrf.mxu0 }
  0xc4   :  { %v270_v23 = vpack.c.bf16 %v252_v13, %v250_v12 }
  0xcb   :  { %v255_v14 = vpop.f32.mrf.mxu0 }
  0xd3   :  { %v257_v15 = vpop.f32.mrf.mxu0 }
  0xd4   :  { %v271_v22 = vpack.c.bf16 %v257_v15, %v255_v14 }
  0xdb   :  { %v260_v16 = vpop.f32.mrf.mxu0 }
  0xe3   :  { %v262_v17 = vpop.f32.mrf.mxu0 }
  0xe4   :  { %v272_v21 = vpack.c.bf16 %v262_v17, %v260_v16  ;;  %v1728_v16 = vld [vmem:[#allocation9 + $0x20] sm:$0xff] }
  0xe5   :  { %524 = vmatpush.bf16.msra.mxu2 %v1728_v16 }
  0xeb   :  { %v265_v18 = vpop.f32.mrf.mxu0 }
  0xf3   :  { %v267_v19 = vpop.f32.mrf.mxu0 }
  0xf4   :  { %v273_v20 = vpack.c.bf16 %v267_v19, %v265_v18 }
  0xf6   :  { %315 = vmatpush.bf16.msra.mxu1 %v273_v20 }
  0xfa   :  { %316 = vmatpush.bf16.msra.mxu1 %v272_v21  ;;  %v1727_v21 = vld [vmem:[#allocation9 + $0x18] sm:$0xff] }
  0xfb   :  { %525 = vmatpush.bf16.msra.mxu2 %v1727_v21 }
  0xfe   :  { %317 = vmatpush.bf16.msra.mxu1 %v271_v22 }
 0x102   :  { %318 = vmatpush.bf16.msra.mxu1 %v270_v23 }
 0x105   :  { %1575 = vmatmul.msk.bf16.vlgmr.msra.gmra.mxu1 %vm298_vm0, %v2095_v24 }
 0x115   :  { %1576 = vmatmul.msk.bf16.gmra.mxu1 %vm298_vm0, %v2102_v25 }
 0x125   :  { %1577 = vmatmul.msk.bf16.gmra.mxu1 %vm298_vm0, %v2109_v26 }
 0x135   :  { %1578 = vmatmul.msk.bf16.gmra.mxu1 %vm298_vm0, %v2116_v27 }
 0x182   :  { %v320_v28 = vpop.f32.mrf.mxu1 }
 0x183   :  { %v321_v36 = vadd.f32 %v1763_v34, %v320_v28  ;;  %v1743_v28 = vld [vmem:[#allocation6 + $0x78] sm:$0xff] }
 0x184   :  { %771 = vmatpush.bf16.msrb.mxu1 %v1743_v28 }
 0x18a   :  { %v322_v29 = vpop.f32.mrf.mxu1 }
 0x18b   :  { %v323_v35 = vadd.f32 %v1763_v34, %v322_v29  ;;  %v1726_v29 = vld [vmem:[#allocation9 + $0x10] sm:$0xff] }
 0x18c   :  { %526 = vmatpush.bf16.msra.mxu2 %v1726_v29 }
 0x18d   :  { %v342_v38 = vadd.f32 %v323_v35, %v321_v36 }
 0x192   :  { %v325_v30 = vpop.f32.mrf.mxu1 }
 0x193   :  { %v326_v37 = vadd.f32 %v1763_v34, %v325_v30 }
 0x195   :  { %v343_v41 = vadd.f32 %v342_v38, %v326_v37 }
 0x19a   :  { %v327_v31 = vpop.f32.mrf.mxu1 }
 0x19b   :  { %v328_v39 = vadd.f32 %v1763_v34, %v327_v31 }
 0x19d   :  { %v344_v43 = vadd.f32 %v343_v41, %v328_v39 }
 0x1a2   :  { %v330_v32 = vpop.f32.mrf.mxu1 }
 0x1a3   :  { %v331_v42 = vadd.f32 %v1763_v34, %v330_v32  ;;  %v1742_v32 = vld [vmem:[#allocation6 + $0x70] sm:$0xff] }
 0x1a4   :  { %772 = vmatpush.bf16.msrb.mxu1 %v1742_v32 }
 0x1a5   :  { %v345_v45 = vadd.f32 %v344_v43, %v331_v42  ;;  %v1738_v43 = vld [vmem:[#allocation6 + $0x50] sm:$0xff] }
 0x1aa   :  { %v332_v33 = vpop.f32.mrf.mxu1 }
 0x1ab   :  { %v333_v44 = vadd.f32 %v1763_v34, %v332_v33  ;;  %v1725_v33 = vld [vmem:[#allocation9 + $0x8] sm:$0xff] }
 0x1ac   :  { %527 = vmatpush.bf16.msra.mxu2 %v1725_v33 }
 0x1ad   :  { %v346_v47 = vadd.f32 %v345_v45, %v333_v44  ;;  %v1737_v45 = vld [vmem:[#allocation6 + $0x48] sm:$0xff] }
 0x1b2   :  { %v335_v40 = vpop.f32.mrf.mxu1 }
 0x1b3   :  { %v336_v46 = vadd.f32 %v1763_v34, %v335_v40  ;;  %v1740_v40 = vld [vmem:[#allocation6 + $0x60] sm:$0xff] }
 0x1b5   :  { %v347_v49 = vadd.f32 %v346_v47, %v336_v46 }
 0x1ba   :  { %v337_v48 = vpop.f32.mrf.mxu1 }
 0x1bb   :  { %v338_v50 = vadd.f32 %v1763_v34, %v337_v48 }
 0x1bd   :  { %v348_v51 = vadd.f32 %v347_v49, %v338_v50  ;;  %v1736_v49 = vld [vmem:[#allocation6 + $0x40] sm:$0xff] }
 0x1bf   :  { %v349_v52 = vrot.slane %v348_v51, 4 }
 0x1c1   :  { %v350_v53 = vadd.f32 %v349_v52, %v348_v51  ;;  %v1732_v51 = vld [vmem:[#allocation2] sm:$0xff] }
 0x1c3   :  { %v351_v54 = vrot.slane %v350_v53, 2 }
 0x1c5   :  { %v352_v55 = vadd.f32 %v351_v54, %v350_v53  ;;  %v1764_v53 = vld [vmem:[%s2705_s6] ss:$0 sm:$0xff] }
 0x1c7   :  { %v353_v56 = vrot.slane %v352_v55, 1 }
 0x1c9   :  { %v354_v57 = vadd.f32 %v353_v56, %v352_v55 }
 0x1cb   :  { %v355_v58 = vmul.f32 0.015625, %v354_v57 }
 0x1cd   :  { %v2123_v60 = vsub.f32 %v321_v36, %v355_v58  ;;  %v2125_v61 = vsub.f32 %v323_v35, %v355_v58  ;;  %v2127_v62 = vsub.f32 %v326_v37, %v355_v58  ;;  %v2129_v63 = vsub.f32 %v328_v39, %v355_v58  ;;  %v1741_v35 = vld [vmem:[#allocation6 + $0x68] sm:$0xff] }
 0x1ce   :  { %v2135_v3 = vsub.f32 %v331_v42, %v355_v58  ;;  %v2139_v6 = vsub.f32 %v333_v44, %v355_v58  ;;  %v2143_v10 = vsub.f32 %v336_v46, %v355_v58  ;;  %v363_v13 = vsub.f32 %v338_v50, %v355_v58  ;;  %v1724_v36 = vld [vmem:[#allocation9] sm:$0xff]  ;;  %773 = vmatpush.bf16.msrb.mxu1 %v1741_v35  ;;  %v1739_v42 = vld [vmem:[#allocation6 + $0x58] sm:$0xff]  ;;  %v1765_v58 = vld [vmem:[#allocation8] ss:$0 sm:$0xff] }
 0x1cf   :  { %v364_v0 = vmul.f32 %v2123_v60, %v2123_v60  ;;  %v365_v1 = vmul.f32 %v2125_v61, %v2125_v61  ;;  %v366_v4 = vmul.f32 %v2127_v62, %v2127_v62  ;;  %v367_v7 = vmul.f32 %v2129_v63, %v2129_v63  ;;  %528 = vmatpush.bf16.msra.mxu2 %v1724_v36 }
 0x1d0   :  { %v368_v11 = vmul.f32 %v2135_v3, %v2135_v3  ;;  %v369_v14 = vmul.f32 %v2139_v6, %v2139_v6  ;;  %v370_v17 = vmul.f32 %v2143_v10, %v2143_v10  ;;  %v371_v19 = vmul.f32 %v363_v13, %v363_v13 }
 0x1d1   :  { %v372_v5 = vadd.f32 %v365_v1, %v364_v0 }
 0x1d2   :  { %774 = vmatpush.bf16.msrb.mxu1 %v1740_v40 }
 0x1d3   :  { %v373_v8 = vadd.f32 %v372_v5, %v366_v4 }
 0x1d5   :  { %v374_v12 = vadd.f32 %v373_v8, %v367_v7  ;;  %v436_v7 = vstv %s435_s0 }
 0x1d6   :  { %775 = vmatpush.bf16.msrb.mxu1 %v1739_v42  ;;  %v1734_v42 = vld [vmem:[#allocation2 + $0x10] sm:$0xff] }
 0x1d7   :  { %v375_v15 = vadd.f32 %v374_v12, %v368_v11 }
 0x1d9   :  { %v376_v18 = vadd.f32 %v375_v15, %v369_v14 }
 0x1da   :  { %776 = vmatpush.bf16.msrb.mxu1 %v1738_v43  ;;  %v1735_v43 = vld [vmem:[#allocation2 + $0x18] sm:$0xff] }
 0x1db   :  { %v377_v20 = vadd.f32 %v376_v18, %v370_v17 }
 0x1dd   :  { %v378_v22 = vadd.f32 %v377_v20, %v371_v19 }
 0x1de   :  { %777 = vmatpush.bf16.msrb.mxu1 %v1737_v45 }
 0x1df   :  { %v379_v23 = vrot.slane %v378_v22, 4 }
 0x1e1   :  { %v380_v30 = vadd.f32 %v379_v23, %v378_v22 }
 0x1e2   :  { %778 = vmatpush.bf16.msrb.mxu1 %v1736_v49 }
 0x1e3   :  { %v381_v31 = vrot.slane %v380_v30, 2 }
 0x1e5   :  { %v382_v34 = vadd.f32 %v381_v31, %v380_v30  ;;  %779 = vmatmul.bf16.vlgmr.msrb.gmra.mxu1 %v1732_v51 }
 0x1e7   :  { %v383_v37 = vrot.slane %v382_v34, 1 }
 0x1e9   :  { %v384_v38 = vadd.f32 %v383_v37, %v382_v34 }
 0x1eb   :  { %v385_v39 = vmul.f32 0.015625, %v384_v38 }
 0x1ed   :  { %v386_v41 = vadd.f32 1e-05, %v385_v39 }
 0x1ef   :  { %1775 = vrsqrt.f32 %v386_v41  ;;  %vm393_vm2 = vweird.f32 %v386_v41 }
 0x1f5   :  { %v1776_v44 = vpop.eup %1775 }
 0x1f6   :  { %v388_v46 = vmul.f32 %v1776_v44, %v386_v41  ;;  %vm394_vm1 = vweird.f32 %v1776_v44 }
 0x1f7   :  { %vm395_vm3 = vmor %vm393_vm2, %vm394_vm1 }
 0x1f8   :  { %v389_v47 = vmul.f32 %v1776_v44, %v388_v46 }
 0x1fa   :  { %v390_v48 = vmul.f32 0.5, %v389_v47 }
 0x1fc   :  { %v391_v50 = vsub.f32 1.5, %v390_v48 }
 0x1fe   :  { %v392_v52 = vmul.f32 %v1776_v44, %v391_v50 }
 0x200   :  { %v396_v54 = vsel %vm395_vm3, %v1776_v44, %v392_v52 }
 0x201   :  { %v404_v55 = vmul.f32 %v396_v54, %v363_v13  ;;  %v397_v56 = vmul.f32 %v396_v54, %v2123_v60  ;;  %v398_v57 = vmul.f32 %v396_v54, %v2125_v61  ;;  %v401_v59 = vmul.f32 %v396_v54, %v2135_v3 }
 0x202   :  { %v402_v0 = vmul.f32 %v396_v54, %v2139_v6  ;;  %v403_v1 = vmul.f32 %v396_v54, %v2143_v10  ;;  %v399_v60 = vmul.f32 %v396_v54, %v2127_v62  ;;  %v400_v61 = vmul.f32 %v396_v54, %v2129_v63  ;;  %v1733_v63 = vld [vmem:[#allocation2 + $0x8] sm:$0xff] }
 0x203   :  { %v415_v2 = vmul.f32 %v1764_v53, %v404_v55  ;;  %v408_v4 = vmul.f32 %v1764_v53, %v397_v56  ;;  %v409_v5 = vmul.f32 %v1764_v53, %v398_v57  ;;  %v412_v8 = vmul.f32 %v1764_v53, %v401_v59  ;;  %784 = vmatmul.bf16.gmra.mxu1 %v1733_v63 }
 0x204   :  { %v413_v9 = vmul.f32 %v1764_v53, %v402_v0  ;;  %v414_v11 = vmul.f32 %v1764_v53, %v403_v1  ;;  %v410_v20 = vmul.f32 %v1764_v53, %v399_v60  ;;  %v411_v22 = vmul.f32 %v1764_v53, %v400_v61 }
 0x205   :  { %v419_v12 = vadd.f32 %v1765_v58, %v408_v4  ;;  %v420_v13 = vadd.f32 %v1765_v58, %v409_v5  ;;  %v423_v14 = vadd.f32 %v1765_v58, %v412_v8  ;;  %v426_v16 = vadd.f32 %v1765_v58, %v415_v2 }
 0x206   :  { %v424_v15 = vadd.f32 %v1765_v58, %v413_v9  ;;  %v425_v3 = vadd.f32 %v1765_v58, %v414_v11  ;;  %v421_v34 = vadd.f32 %v1765_v58, %v410_v20  ;;  %v422_v35 = vadd.f32 %v1765_v58, %v411_v22 }
 0x207   :  { %vm427_vm4 = vcmp.ge.f32.partialorder %v419_v12, 0.0  ;;  %vm428_vm5 = vcmp.ge.f32.partialorder %v420_v13, 0.0  ;;  %v437_v6 = vmul.f32 %v436_v7, %v419_v12  ;;  %v438_v10 = vmul.f32 %v436_v7, %v420_v13 }
 0x208   :  { %vm431_vm6 = vcmp.ge.f32.partialorder %v423_v14, 0.0  ;;  %vm432_vm7 = vcmp.ge.f32.partialorder %v424_v15, 0.0  ;;  %v441_v21 = vmul.f32 %v436_v7, %v423_v14  ;;  %v442_v23 = vmul.f32 %v436_v7, %v424_v15 }
 0x209   :  { %v445_v17 = vsel %vm427_vm4, %v419_v12, %v437_v6  ;;  %v446_v18 = vsel %vm428_vm5, %v420_v13, %v438_v10  ;;  %vm433_vm8 = vcmp.ge.f32.partialorder %v425_v3, 0.0  ;;  %vm434_vm9 = vcmp.ge.f32.partialorder %v426_v16, 0.0 }
 0x20a   :  { %v453_v19 = vpack.c.bf16 %v446_v18, %v445_v17  ;;  %v449_v62 = vsel %vm431_vm6, %v423_v14, %v441_v21  ;;  %v443_v28 = vmul.f32 %v436_v7, %v425_v3  ;;  %v444_v29 = vmul.f32 %v436_v7, %v426_v16 }
 0x20b   :  { %v450_v30 = vsel %vm432_vm7, %v424_v15, %v442_v23  ;;  %v439_v37 = vmul.f32 %v436_v7, %v421_v34  ;;  %v440_v38 = vmul.f32 %v436_v7, %v422_v35  ;;  %vm429_vm10 = vcmp.ge.f32.partialorder %v421_v34, 0.0  ;;  %v1766_v15 = vld [vmem:[%s2708_s9] ss:$0 sm:$0xff] }
 0x20c   :  { %529 = vmatmul.bf16.vlgmr.msra.gmra.mxu2 %v453_v19  ;;  %v455_v31 = vpack.c.bf16 %v450_v30, %v449_v62  ;;  %v451_v32 = vsel %vm433_vm8, %v425_v3, %v443_v28  ;;  %v452_v33 = vsel %vm434_vm9, %v426_v16, %v444_v29  ;;  %vm430_vm11 = vcmp.ge.f32.partialorder %v422_v35, 0.0 }
 0x20d   :  { %v456_v36 = vpack.c.bf16 %v452_v33, %v451_v32  ;;  %v447_v39 = vsel %vm429_vm10, %v421_v34, %v439_v37  ;;  %v448_v40 = vsel %vm430_vm11, %v422_v35, %v440_v38 }
 0x20e   :  { %v454_v41 = vpack.c.bf16 %v448_v40, %v447_v39 }
 0x213   :  { %789 = vmatmul.bf16.gmra.mxu1 %v1734_v42 }
 0x21c   :  { %534 = vmatmul.bf16.gmra.mxu2 %v454_v41 }
 0x223   :  { %794 = vmatmul.bf16.gmra.mxu1 %v1735_v43 }
 0x22c   :  { %539 = vmatmul.bf16.gmra.mxu2 %v455_v31 }
 0x23c   :  { %544 = vmatmul.bf16.gmra.mxu2 %v456_v36 }
 0x262   :  { %v780_v44 = vpop.f32.mrf.mxu1 }
 0x26a   :  { %v782_v46 = vpop.f32.mrf.mxu1 }
 0x26b   :  { %v800_v9 = vpack.c.bf16 %v782_v46, %v780_v44 }
 0x280   :  { %v785_v48 = vpop.f32.mrf.mxu1 }
 0x288   :  { %v787_v51 = vpop.f32.mrf.mxu1 }
 0x289   :  { %v801_v8 = vpack.c.bf16 %v787_v51, %v785_v48 }
 0x28f   :  { %v530_v45 = vpop.f32.mrf.mxu2 }
 0x290   :  { %v790_v53 = vpop.f32.mrf.mxu1 }
 0x297   :  { %v532_v47 = vpop.f32.mrf.mxu2 }
 0x298   :  { %v792_v55 = vpop.f32.mrf.mxu1  ;;  %v550_v5 = vpack.c.bf16 %v532_v47, %v530_v45 }
 0x299   :  { %v802_v7 = vpack.c.bf16 %v792_v55, %v790_v53 }
 0x29f   :  { %v535_v49 = vpop.f32.mrf.mxu2 }
 0x2a0   :  { %v795_v57 = vpop.f32.mrf.mxu1 }
 0x2a7   :  { %v537_v50 = vpop.f32.mrf.mxu2 }
 0x2a8   :  { %v551_v1 = vpack.c.bf16 %v537_v50, %v535_v49  ;;  %v797_v2 = vpop.f32.mrf.mxu1 }
 0x2a9   :  { %v803_v4 = vpack.c.bf16 %v797_v2, %v795_v57 }
 0x2af   :  { %v540_v52 = vpop.f32.mrf.mxu2 }
 0x2b7   :  { %v542_v54 = vpop.f32.mrf.mxu2 }
 0x2b8   :  { %v552_v0 = vpack.c.bf16 %v542_v54, %v540_v52 }
 0x2bf   :  { %v545_v56 = vpop.f32.mrf.mxu2 }
 0x2c7   :  { %v547_v58 = vpop.f32.mrf.mxu2 }
 0x2c8   :  { %v553_v59 = vpack.c.bf16 %v547_v58, %v545_v56 }
 0x2ca   :  { %562 = vmatpush.bf16.msra.mxu3 %v553_v59 }
 0x2ce   :  { %563 = vmatpush.bf16.msra.mxu3 %v552_v0 }
 0x2d2   :  { %564 = vmatpush.bf16.msra.mxu3 %v551_v1 }
 0x2d6   :  { %565 = vmatpush.bf16.msra.mxu3 %v550_v5 }
 0x2d9   :  { %1611 = vmatmul.msk.bf16.vlgmr.msra.gmra.mxu3 %vm298_vm0, %v2095_v24 }
 0x2da   :  { %813 = vmatpush.bf16.msrb.mxu3 %v803_v4 }
 0x2de   :  { %814 = vmatpush.bf16.msrb.mxu3 %v802_v7 }
 0x2e2   :  { %815 = vmatpush.bf16.msrb.mxu3 %v801_v8 }
 0x2e6   :  { %816 = vmatpush.bf16.msrb.mxu3 %v800_v9 }
 0x2e9   :  { %1612 = vmatmul.msk.bf16.gmra.mxu3 %vm298_vm0, %v2102_v25 }
 0x2f9   :  { %1613 = vmatmul.msk.bf16.gmra.mxu3 %vm298_vm0, %v2109_v26 }
 0x309   :  { %1614 = vmatmul.msk.bf16.gmra.mxu3 %vm298_vm0, %v2116_v27 }
 0x319   :  { %1664 = vmatmul.msk.bf16.vlgmr.msrb.gmra.mxu3 %vm298_vm0, %v2095_v24 }
 0x329   :  { %1665 = vmatmul.msk.bf16.gmra.mxu3 %vm298_vm0, %v2102_v25 }
 0x339   :  { %1666 = vmatmul.msk.bf16.gmra.mxu3 %vm298_vm0, %v2109_v26 }
 0x349   :  { %1667 = vmatmul.msk.bf16.gmra.mxu3 %vm298_vm0, %v2116_v27 }
 0x35c   :  { %v567_v11 = vpop.f32.mrf.mxu3 }
 0x35d   :  { %v568_v16 = vadd.f32 %v1766_v15, %v567_v11 }
 0x364   :  { %v569_v12 = vpop.f32.mrf.mxu3 }
 0x365   :  { %v570_v3 = vadd.f32 %v1766_v15, %v569_v12 }
 0x367   :  { %v589_v10 = vadd.f32 %v570_v3, %v568_v16 }
 0x36c   :  { %v572_v13 = vpop.f32.mrf.mxu3 }
 0x36d   :  { %v573_v6 = vadd.f32 %v1766_v15, %v572_v13 }
 0x36f   :  { %v590_v19 = vadd.f32 %v589_v10, %v573_v6 }
 0x374   :  { %v574_v60 = vpop.f32.mrf.mxu3 }
 0x375   :  { %v575_v17 = vadd.f32 %v1766_v15, %v574_v60 }
 0x377   :  { %v591_v21 = vadd.f32 %v590_v19, %v575_v17 }
 0x37c   :  { %v577_v61 = vpop.f32.mrf.mxu3 }
 0x37d   :  { %v578_v20 = vadd.f32 %v1766_v15, %v577_v61 }
 0x37f   :  { %v592_v23 = vadd.f32 %v591_v21, %v578_v20 }
 0x384   :  { %v579_v14 = vpop.f32.mrf.mxu3 }
 0x385   :  { %v580_v22 = vadd.f32 %v1766_v15, %v579_v14 }
 0x387   :  { %v593_v63 = vadd.f32 %v592_v23, %v580_v22 }
 0x38c   :  { %v582_v18 = vpop.f32.mrf.mxu3 }
 0x38d   :  { %v583_v62 = vadd.f32 %v1766_v15, %v582_v18 }
 0x38f   :  { %v594_v29 = vadd.f32 %v593_v63, %v583_v62 }
 0x394   :  { %v584_v28 = vpop.f32.mrf.mxu3 }
 0x395   :  { %v585_v30 = vadd.f32 %v1766_v15, %v584_v28 }
 0x397   :  { %v595_v31 = vadd.f32 %v594_v29, %v585_v30 }
 0x399   :  { %v596_v32 = vrot.slane %v595_v31, 4 }
 0x39b   :  { %v597_v33 = vadd.f32 %v596_v32, %v595_v31 }
 0x39c   :  { %v818_v34 = vpop.f32.mrf.mxu3 }
 0x39d   :  { %v598_v35 = vrot.slane %v597_v33, 2 }
 0x39f   :  { %v599_v36 = vadd.f32 %v598_v35, %v597_v33 }
 0x3a1   :  { %v600_v37 = vrot.slane %v599_v36, 1 }
 0x3a3   :  { %v601_v38 = vadd.f32 %v600_v37, %v599_v36 }
 0x3a4   :  { %v820_v39 = vpop.f32.mrf.mxu3 }
 0x3a5   :  { %v602_v40 = vmul.f32 0.015625, %v601_v38 }
 0x3a7   :  { %v2180_v41 = vsub.f32 %v568_v16, %v602_v40  ;;  %v2182_v42 = vsub.f32 %v570_v3, %v602_v40  ;;  %v2184_v43 = vsub.f32 %v573_v6, %v602_v40  ;;  %v2186_v44 = vsub.f32 %v575_v17, %v602_v40  ;;  %v1767_v3 = vld [vmem:[%s2704_s5 + $0x1] ss:$0 sm:$0xff] }
 0x3a8   :  { %v2192_v47 = vsub.f32 %v578_v20, %v602_v40  ;;  %v2196_v51 = vsub.f32 %v580_v22, %v602_v40  ;;  %v609_v54 = vsub.f32 %v583_v62, %v602_v40  ;;  %v2202_v57 = vsub.f32 %v585_v30, %v602_v40 }
 0x3a9   :  { %v611_v45 = vmul.f32 %v2180_v41, %v2180_v41  ;;  %v612_v46 = vmul.f32 %v2182_v42, %v2182_v42  ;;  %v613_v48 = vmul.f32 %v2184_v43, %v2184_v43  ;;  %v614_v52 = vmul.f32 %v2186_v44, %v2186_v44 }
 0x3aa   :  { %v615_v55 = vmul.f32 %v2192_v47, %v2192_v47  ;;  %v616_v58 = vmul.f32 %v2196_v51, %v2196_v51  ;;  %v617_v0 = vmul.f32 %v609_v54, %v609_v54  ;;  %v618_v4 = vmul.f32 %v2202_v57, %v2202_v57 }
 0x3ab   :  { %v619_v49 = vadd.f32 %v612_v46, %v611_v45  ;;  %v2211_v6 = vadd.f32 %v1767_v3, %v820_v39  ;;  %v819_v10 = vadd.f32 %v1767_v3, %v818_v34  ;;  %v1769_v45 = vld [vmem:[%s2709_s10] ss:$0 sm:$0xff] }
 0x3ac   :  { %v823_v50 = vpop.f32.mrf.mxu3 }
 0x3ad   :  { %v620_v53 = vadd.f32 %v619_v49, %v613_v48  ;;  %v824_v17 = vadd.f32 %v1767_v3, %v823_v50  ;;  %v842_v18 = vadd.f32 %v2211_v6, %v819_v10  ;;  %v1770_v50 = vld [vmem:[#allocation11] ss:$0 sm:$0xff] }
 0x3af   :  { %v621_v56 = vadd.f32 %v620_v53, %v614_v52  ;;  %v843_v21 = vadd.f32 %v842_v18, %v824_v17 }
 0x3b1   :  { %v622_v59 = vadd.f32 %v621_v56, %v615_v55 }
 0x3b3   :  { %v623_v1 = vadd.f32 %v622_v59, %v616_v58 }
 0x3b4   :  { %v825_v2 = vpop.f32.mrf.mxu3 }
 0x3b5   :  { %v624_v5 = vadd.f32 %v623_v1, %v617_v0  ;;  %v2214_v19 = vadd.f32 %v1767_v3, %v825_v2 }
 0x3b7   :  { %v625_v7 = vadd.f32 %v624_v5, %v618_v4  ;;  %v844_v62 = vadd.f32 %v843_v21, %v2214_v19 }
 0x3b9   :  { %v626_v8 = vrot.slane %v625_v7, 4 }
 0x3bb   :  { %v627_v9 = vadd.f32 %v626_v8, %v625_v7 }
 0x3bc   :  { %v828_v11 = vpop.f32.mrf.mxu3 }
 0x3bd   :  { %v628_v12 = vrot.slane %v627_v9, 2  ;;  %v2216_v22 = vadd.f32 %v1767_v3, %v828_v11 }
 0x3bf   :  { %v629_v13 = vadd.f32 %v628_v12, %v627_v9  ;;  %v845_v29 = vadd.f32 %v844_v62, %v2216_v22 }
 0x3c1   :  { %v630_v60 = vrot.slane %v629_v13, 1 }
 0x3c3   :  { %v631_v61 = vadd.f32 %v630_v60, %v629_v13 }
 0x3c4   :  { %v830_v14 = vpop.f32.mrf.mxu3 }
 0x3c5   :  { %v632_v15 = vmul.f32 0.015625, %v631_v61  ;;  %v2219_v63 = vadd.f32 %v1767_v3, %v830_v14 }
 0x3c7   :  { %v633_v16 = vadd.f32 1e-05, %v632_v15  ;;  %v846_v32 = vadd.f32 %v845_v29, %v2219_v63 }
 0x3c9   :  { %1777 = vrsqrt.f32 %v633_v16  ;;  %vm640_vm13 = vweird.f32 %v633_v16 }
 0x3cc   :  { %v833_v20 = vpop.f32.mrf.mxu3 }
 0x3cd   :  { %v2222_v30 = vadd.f32 %v1767_v3, %v833_v20 }
 0x3cf   :  { %v1778_v23 = vpop.eup %1777  ;;  %v847_v35 = vadd.f32 %v846_v32, %v2222_v30 }
 0x3d0   :  { %v635_v28 = vmul.f32 %v1778_v23, %v633_v16  ;;  %vm641_vm12 = vweird.f32 %v1778_v23 }
 0x3d1   :  { %vm642_vm14 = vmor %vm640_vm13, %vm641_vm12 }
 0x3d2   :  { %v636_v31 = vmul.f32 %v1778_v23, %v635_v28 }
 0x3d4   :  { %v637_v33 = vmul.f32 0.5, %v636_v31  ;;  %v835_v34 = vpop.f32.mrf.mxu3 }
 0x3d5   :  { %v2226_v36 = vadd.f32 %v1767_v3, %v835_v34 }
 0x3d6   :  { %v638_v37 = vsub.f32 1.5, %v637_v33 }
 0x3d7   :  { %v848_v38 = vadd.f32 %v847_v35, %v2226_v36 }
 0x3d8   :  { %v639_v39 = vmul.f32 %v1778_v23, %v638_v37 }
 0x3d9   :  { %v849_v40 = vrot.slane %v848_v38, 4 }
 0x3da   :  { %v643_v46 = vsel %vm642_vm14, %v1778_v23, %v639_v39 }
 0x3db   :  { %v850_v48 = vadd.f32 %v849_v40, %v848_v38  ;;  %v647_v49 = vmul.f32 %v643_v46, %v2186_v44  ;;  %v646_v52 = vmul.f32 %v643_v46, %v2184_v43  ;;  %v644_v53 = vmul.f32 %v643_v46, %v2180_v41 }
 0x3dc   :  { %v650_v55 = vmul.f32 %v643_v46, %v609_v54  ;;  %v648_v0 = vmul.f32 %v643_v46, %v2192_v47  ;;  %v645_v2 = vmul.f32 %v643_v46, %v2182_v42  ;;  %v651_v12 = vmul.f32 %v643_v46, %v2202_v57 }
 0x3dd   :  { %v851_v56 = vrot.slane %v850_v48, 2  ;;  %v658_v58 = vmul.f32 %v1769_v45, %v647_v49  ;;  %v657_v59 = vmul.f32 %v1769_v45, %v646_v52  ;;  %v655_v1 = vmul.f32 %v1769_v45, %v644_v53  ;;  %v1750_v52 = vld [vmem:[#allocation9 + $0x70] sm:$0xff] }
 0x3de   :  { %v661_v8 = vmul.f32 %v1769_v45, %v650_v55  ;;  %v659_v9 = vmul.f32 %v1769_v45, %v648_v0  ;;  %v656_v42 = vmul.f32 %v1769_v45, %v645_v2  ;;  %v649_v15 = vmul.f32 %v643_v46, %v2196_v51  ;;  %v1749_v55 = vld [vmem:[#allocation9 + $0x68] sm:$0xff] }
 0x3df   :  { %v852_v4 = vadd.f32 %v851_v56, %v850_v48  ;;  %v2237_v5 = vadd.f32 %v1770_v50, %v658_v58  ;;  %v2239_v7 = vadd.f32 %v1770_v50, %v657_v59  ;;  %v2241_v44 = vadd.f32 %v1770_v50, %v655_v1  ;;  %v1748_v59 = vld [vmem:[#allocation9 + $0x60] sm:$0xff]  ;;  %v1747_v1 = vld [vmem:[#allocation9 + $0x58] sm:$0xff] }
 0x3e0   :  { %v2250_v13 = vadd.f32 %v1770_v50, %v661_v8  ;;  %v2252_v61 = vadd.f32 %v1770_v50, %v659_v9  ;;  %v2254_v14 = vadd.f32 %v1770_v50, %v656_v42  ;;  %v662_v20 = vmul.f32 %v1769_v45, %v651_v12  ;;  %v1746_v8 = vld [vmem:[#allocation9 + $0x50] sm:$0xff]  ;;  %v1744_v9 = vld [vmem:[#allocation9 + $0x40] sm:$0xff] }
 0x3e1   :  { %v853_v43 = vrot.slane %v852_v4, 1  ;;  %v1181_v41 = vmul.f32 %v2237_v5, %v2237_v5  ;;  %v1180_v54 = vmul.f32 %v2239_v7, %v2239_v7  ;;  %v1178_v47 = vmul.f32 %v2241_v44, %v2241_v44 }
 0x3e2   :  { %v1184_v57 = vmul.f32 %v2250_v13, %v2250_v13  ;;  %v2285_v33 = vadd.f32 %v1770_v50, %v662_v20 }
 0x3e3   :  { %v854_v11 = vadd.f32 %v853_v43, %v852_v4  ;;  %1192 = vadd.xlane.f32.xlu2 %v1181_v41  ;;  %1190 = vadd.xlane.f32.xlu1 %v1180_v54  ;;  %v1745_v54 = vld [vmem:[#allocation9 + $0x48] sm:$0xff] }
 0x3e4   :  { %1186 = vadd.xlane.f32.xlu0 %v1178_v47 }
 0x3e5   :  { %v855_v60 = vmul.f32 0.015625, %v854_v11 }
 0x3e7   :  { %v2257_v3 = vsub.f32 %v819_v10, %v855_v60  ;;  %v2260_v16 = vsub.f32 %v2211_v6, %v855_v60  ;;  %v2262_v18 = vsub.f32 %v824_v17, %v855_v60  ;;  %v2267_v21 = vsub.f32 %v2214_v19, %v855_v60 }
 0x3e8   :  { %v1182_v10 = vmul.f32 %v2252_v61, %v2252_v61  ;;  %v1179_v6 = vmul.f32 %v2254_v14, %v2254_v14  ;;  %v660_v17 = vmul.f32 %v1769_v45, %v649_v15  ;;  %v2278_v62 = vsub.f32 %v2216_v22, %v855_v60  ;;  %v1751_v45 = vld [vmem:[#allocation9 + $0x78] sm:$0xff] }
 0x3e9   :  { %v864_v23 = vmul.f32 %v2257_v3, %v2257_v3  ;;  %v865_v51 = vmul.f32 %v2260_v16, %v2260_v16  ;;  %v866_v19 = vmul.f32 %v2262_v18, %v2262_v18  ;;  %v861_v29 = vsub.f32 %v2219_v63, %v855_v60  ;;  %1022 = vmatpush.bf16.msrb.mxu0 %v1751_v45 }
 0x3ea   :  { %v867_v31 = vmul.f32 %v2267_v21, %v2267_v21  ;;  %v2287_v34 = vadd.f32 %v1770_v50, %v660_v17  ;;  %v862_v22 = vsub.f32 %v2222_v30, %v855_v60  ;;  %v868_v35 = vmul.f32 %v2278_v62, %v2278_v62 }
 0x3eb   :  { %v872_v28 = vadd.f32 %v865_v51, %v864_v23  ;;  %1198 = vadd.xlane.f32.xlu2 %v1184_v57  ;;  %1194 = vadd.xlane.f32.xlu1 %v1182_v10  ;;  %v863_v38 = vsub.f32 %v2226_v36, %v855_v60  ;;  %v869_v39 = vmul.f32 %v861_v29, %v861_v29  ;;  %v1768_v57 = vld [vmem:[%s2705_s6 + $0x1] ss:$0 sm:$0xff] }
 0x3ec   :  { %1188 = vadd.xlane.f32.xlu0 %v1179_v6  ;;  %v1185_v63 = vmul.f32 %v2285_v33, %v2285_v33  ;;  %v1183_v46 = vmul.f32 %v2287_v34, %v2287_v34  ;;  %v870_v48 = vmul.f32 %v862_v22, %v862_v22  ;;  %v1771_v6 = vld [vmem:[#allocation8 + $0x1] ss:$0 sm:$0xff] }
 0x3ed   :  { %v873_v32 = vadd.f32 %v872_v28, %v866_v19  ;;  %v871_v30 = vmul.f32 %v863_v38, %v863_v38  ;;  %1023 = vmatpush.bf16.msrb.mxu0 %v1750_v52 }
 0x3ef   :  { %v874_v37 = vadd.f32 %v873_v32, %v867_v31 }
 0x3f1   :  { %v875_v40 = vadd.f32 %v874_v37, %v868_v35  ;;  %1024 = vmatpush.bf16.msrb.mxu0 %v1749_v55  ;;  %v936_v37 = vstv %s1669_s12 }
 0x3f3   :  { %v876_v49 = vadd.f32 %v875_v40, %v869_v39  ;;  %1200 = vadd.xlane.f32.xlu1 %v1185_v63 }
 0x3f4   :  { %1196 = vadd.xlane.f32.xlu0 %v1183_v46 }
 0x3f5   :  { %v877_v50 = vadd.f32 %v876_v49, %v870_v48  ;;  %1025 = vmatpush.bf16.msrb.mxu0 %v1748_v59 }
 0x3f7   :  { %v878_v53 = vadd.f32 %v877_v50, %v871_v30 }
 0x3f9   :  { %v879_v36 = vrot.slane %v878_v53, 4  ;;  %1026 = vmatpush.bf16.msrb.mxu0 %v1747_v1 }
 0x3fb   :  { %v880_v56 = vadd.f32 %v879_v36, %v878_v53 }
 0x3fd   :  { %v881_v58 = vrot.slane %v880_v56, 2  ;;  %1027 = vmatpush.bf16.msrb.mxu0 %v1746_v8 }
 0x3ff   :  { %v882_v0 = vadd.f32 %v881_v58, %v880_v56 }
 0x401   :  { %v883_v2 = vrot.slane %v882_v0, 1  ;;  %1028 = vmatpush.bf16.msrb.mxu0 %v1745_v54 }
 0x403   :  { %v884_v4 = vadd.f32 %v883_v2, %v882_v0 }
 0x405   :  { %v885_v43 = vmul.f32 0.015625, %v884_v4  ;;  %1029 = vmatpush.bf16.msrb.mxu0 %v1744_v9 }
 0x407   :  { %v886_v41 = vadd.f32 1e-05, %v885_v43 }
 0x409   :  { %1779 = vrsqrt.f32 %v886_v41  ;;  %vm893_vm1 = vweird.f32 %v886_v41 }
 0x40f   :  { %v1780_v47 = vpop.eup %1779 }
 0x410   :  { %v888_v42 = vmul.f32 %v1780_v47, %v886_v41  ;;  %vm894_vm15 = vweird.f32 %v1780_v47 }
 0x411   :  { %vm895_vm2 = vmor %vm893_vm1, %vm894_vm15 }
 0x412   :  { %v889_v11 = vmul.f32 %v1780_v47, %v888_v42 }
 0x414   :  { %v890_v12 = vmul.f32 0.5, %v889_v11 }
 0x416   :  { %v891_v60 = vsub.f32 1.5, %v890_v12 }
 0x418   :  { %v892_v15 = vmul.f32 %v1780_v47, %v891_v60 }
 0x41a   :  { %v896_v20 = vsel %vm895_vm2, %v1780_v47, %v892_v15 }
 0x41b   :  { %v904_v23 = vmul.f32 %v896_v20, %v863_v38  ;;  %v897_v51 = vmul.f32 %v896_v20, %v2257_v3  ;;  %v898_v10 = vmul.f32 %v896_v20, %v2260_v16  ;;  %v901_v17 = vmul.f32 %v896_v20, %v2278_v62 }
 0x41c   :  { %v902_v19 = vmul.f32 %v896_v20, %v861_v29  ;;  %v903_v28 = vmul.f32 %v896_v20, %v862_v22  ;;  %v899_v38 = vmul.f32 %v896_v20, %v2262_v18  ;;  %v900_v3 = vmul.f32 %v896_v20, %v2267_v21 }
 0x41d   :  { %v915_v31 = vmul.f32 %v1768_v57, %v904_v23  ;;  %v908_v32 = vmul.f32 %v1768_v57, %v897_v51  ;;  %v909_v35 = vmul.f32 %v1768_v57, %v898_v10  ;;  %v912_v39 = vmul.f32 %v1768_v57, %v901_v17 }
 0x41e   :  { %v913_v40 = vmul.f32 %v1768_v57, %v902_v19  ;;  %v914_v63 = vmul.f32 %v1768_v57, %v903_v28  ;;  %v910_v53 = vmul.f32 %v1768_v57, %v899_v38  ;;  %v911_v55 = vmul.f32 %v1768_v57, %v900_v3 }
 0x41f   :  { %v919_v45 = vadd.f32 %v1771_v6, %v908_v32  ;;  %v920_v46 = vadd.f32 %v1771_v6, %v909_v35  ;;  %v923_v48 = vadd.f32 %v1771_v6, %v912_v39  ;;  %v926_v30 = vadd.f32 %v1771_v6, %v915_v31 }
 0x420   :  { %v924_v16 = vadd.f32 %v1771_v6, %v913_v40  ;;  %v925_v49 = vadd.f32 %v1771_v6, %v914_v63  ;;  %v921_v4 = vadd.f32 %v1771_v6, %v910_v53  ;;  %v922_v8 = vadd.f32 %v1771_v6, %v911_v55  ;;  %v1772_v40 = vld [vmem:[%s2708_s9 + $0x1] ss:$0 sm:$0xff] }
 0x421   :  { %vm927_vm3 = vcmp.ge.f32.partialorder %v919_v45, 0.0  ;;  %vm928_vm4 = vcmp.ge.f32.partialorder %v920_v46, 0.0  ;;  %v937_v62 = vmul.f32 %v936_v37, %v919_v45  ;;  %v938_v29 = vmul.f32 %v936_v37, %v920_v46 }
 0x422   :  { %vm931_vm5 = vcmp.ge.f32.partialorder %v923_v48, 0.0  ;;  %vm932_vm6 = vcmp.ge.f32.partialorder %v924_v16, 0.0  ;;  %v941_v36 = vmul.f32 %v936_v37, %v923_v48  ;;  %v942_v56 = vmul.f32 %v936_v37, %v924_v16 }
 0x423   :  { %v945_v22 = vsel %vm927_vm3, %v919_v45, %v937_v62  ;;  %v946_v50 = vsel %vm928_vm4, %v920_v46, %v938_v29  ;;  %vm933_vm7 = vcmp.ge.f32.partialorder %v925_v49, 0.0  ;;  %vm934_vm8 = vcmp.ge.f32.partialorder %v926_v30, 0.0 }
 0x424   :  { %v953_v52 = vpack.c.bf16 %v946_v50, %v945_v22  ;;  %v949_v18 = vsel %vm931_vm5, %v923_v48, %v941_v36  ;;  %v943_v21 = vmul.f32 %v936_v37, %v925_v49  ;;  %v944_v58 = vmul.f32 %v936_v37, %v926_v30 }
 0x425   :  { %v950_v59 = vsel %vm932_vm6, %v924_v16, %v942_v56  ;;  %v939_v41 = vmul.f32 %v936_v37, %v921_v4  ;;  %v940_v54 = vmul.f32 %v936_v37, %v922_v8  ;;  %vm929_vm9 = vcmp.ge.f32.partialorder %v921_v4, 0.0 }
 0x426   :  { %1030 = vmatmul.bf16.vlgmr.msrb.gmra.mxu0 %v953_v52  ;;  %v955_v0 = vpack.c.bf16 %v950_v59, %v949_v18  ;;  %v951_v1 = vsel %vm933_vm7, %v925_v49, %v943_v21  ;;  %v952_v2 = vsel %vm934_vm8, %v926_v30, %v944_v58  ;;  %vm930_vm10 = vcmp.ge.f32.partialorder %v922_v8, 0.0 }
 0x427   :  { %v956_v43 = vpack.c.bf16 %v952_v2, %v951_v1  ;;  %v947_v9 = vsel %vm929_vm9, %v921_v4, %v939_v41  ;;  %v948_v47 = vsel %vm930_vm10, %v922_v8, %v940_v54 }
 0x428   :  { %v954_v42 = vpack.c.bf16 %v948_v47, %v947_v9 }
 0x436   :  { %1035 = vmatmul.bf16.gmra.mxu0 %v954_v42 }
 0x446   :  { %1040 = vmatmul.bf16.gmra.mxu0 %v955_v0 }
 0x456   :  { %1045 = vmatmul.bf16.gmra.mxu0 %v956_v43 }
 0x4a3   :  { %v1031_v11 = vpop.f32.mrf.mxu0 }
 0x4ab   :  { %v1033_v12 = vpop.f32.mrf.mxu0 }
 0x4ac   :  { %v1051_v19 = vpack.c.bf16 %v1033_v12, %v1031_v11 }
 0x4b3   :  { %v1036_v60 = vpop.f32.mrf.mxu0 }
 0x4bb   :  { %v1038_v15 = vpop.f32.mrf.mxu0 }
 0x4bc   :  { %v1052_v17 = vpack.c.bf16 %v1038_v15, %v1036_v60 }
 0x4c3   :  { %v1041_v57 = vpop.f32.mrf.mxu0 }
 0x4cb   :  { %v1043_v20 = vpop.f32.mrf.mxu0 }
 0x4cc   :  { %v1053_v6 = vpack.c.bf16 %v1043_v20, %v1041_v57 }
 0x4d3   :  { %v1046_v23 = vpop.f32.mrf.mxu0 }
 0x4db   :  { %v1048_v51 = vpop.f32.mrf.mxu0 }
 0x4dc   :  { %v1054_v10 = vpack.c.bf16 %v1048_v51, %v1046_v23 }
 0x4de   :  { %1064 = vmatpush.bf16.msrb.mxu2 %v1054_v10 }
 0x4e2   :  { %1065 = vmatpush.bf16.msrb.mxu2 %v1053_v6 }
 0x4e6   :  { %1066 = vmatpush.bf16.msrb.mxu2 %v1052_v17 }
 0x4ea   :  { %1067 = vmatpush.bf16.msrb.mxu2 %v1051_v19 }
 0x4ed   :  { %1703 = vmatmul.msk.bf16.vlgmr.msrb.gmra.mxu2 %vm298_vm0, %v2095_v24 }
 0x4fd   :  { %1704 = vmatmul.msk.bf16.gmra.mxu2 %vm298_vm0, %v2102_v25 }
 0x50d   :  { %1705 = vmatmul.msk.bf16.gmra.mxu2 %vm298_vm0, %v2109_v26 }
 0x51d   :  { %1706 = vmatmul.msk.bf16.gmra.mxu2 %vm298_vm0, %v2116_v27 }
 0x570   :  { %v1069_v28 = vpop.f32.mrf.mxu2 }
 0x571   :  { %v1070_v63 = vadd.f32 %v1772_v40, %v1069_v28 }
 0x578   :  { %v1071_v31 = vpop.f32.mrf.mxu2 }
 0x579   :  { %v1072_v24 = vadd.f32 %v1772_v40, %v1071_v31 }
 0x57b   :  { %v1093_v25 = vadd.f32 %v1072_v24, %v1070_v63 }
 0x580   :  { %v1074_v32 = vpop.f32.mrf.mxu2 }
 0x581   :  { %v1075_v45 = vadd.f32 %v1772_v40, %v1074_v32 }
 0x583   :  { %v1094_v26 = vadd.f32 %v1093_v25, %v1075_v45 }
 0x588   :  { %v1076_v35 = vpop.f32.mrf.mxu2 }
 0x589   :  { %v1077_v46 = vadd.f32 %v1772_v40, %v1076_v35 }
 0x58b   :  { %v1095_v48 = vadd.f32 %v1094_v26, %v1077_v46 }
 0x590   :  { %v1079_v37 = vpop.f32.mrf.mxu2 }
 0x591   :  { %v1080_v3 = vadd.f32 %v1772_v40, %v1079_v37 }
 0x593   :  { %v1096_v16 = vadd.f32 %v1095_v48, %v1080_v3  ;;  %v1774_v48 = vld [vmem:[#allocation11 + $0x1] ss:$0 sm:$0xff] }
 0x598   :  { %v1081_v39 = vpop.f32.mrf.mxu2 }
 0x599   :  { %v1082_v27 = vadd.f32 %v1772_v40, %v1081_v39 }
 0x59b   :  { %v1097_v30 = vadd.f32 %v1096_v16, %v1082_v27 }
 0x5a0   :  { %v1084_v38 = vpop.f32.mrf.mxu2 }
 0x5a1   :  { %v1085_v49 = vadd.f32 %v1772_v40, %v1084_v38  ;;  %v1773_v38 = vld [vmem:[%s2709_s10 + $0x1] ss:$0 sm:$0xff] }
 0x5a3   :  { %v1098_v29 = vadd.f32 %v1097_v30, %v1085_v49 }
 0x5a8   :  { %v1086_v62 = vpop.f32.mrf.mxu2 }
 0x5a9   :  { %v1087_v22 = vadd.f32 %v1772_v40, %v1086_v62 }
 0x5ab   :  { %v1099_v50 = vadd.f32 %v1098_v29, %v1087_v22 }
 0x5ad   :  { %v1100_v52 = vrot.slane %v1099_v50, 4 }
 0x5af   :  { %v1101_v53 = vadd.f32 %v1100_v52, %v1099_v50 }
 0x5b1   :  { %v1102_v36 = vrot.slane %v1101_v53, 2 }
 0x5b3   :  { %v1103_v55 = vadd.f32 %v1102_v36, %v1101_v53 }
 0x5b5   :  { %v1104_v56 = vrot.slane %v1103_v55, 1 }
 0x5b7   :  { %v1105_v18 = vadd.f32 %v1104_v56, %v1103_v55 }
 0x5b9   :  { %v1106_v21 = vmul.f32 0.015625, %v1105_v18 }
 0x5bb   :  { %v1107_v58 = vsub.f32 %v1070_v63, %v1106_v21  ;;  %v1108_v59 = vsub.f32 %v1072_v24, %v1106_v21  ;;  %v1109_v0 = vsub.f32 %v1075_v45, %v1106_v21  ;;  %v1110_v1 = vsub.f32 %v1077_v46, %v1106_v21 }
 0x5bc   :  { %v1111_v8 = vsub.f32 %v1080_v3, %v1106_v21  ;;  %v1112_v54 = vsub.f32 %v1082_v27, %v1106_v21  ;;  %v1113_v42 = vsub.f32 %v1085_v49, %v1106_v21  ;;  %v1114_v60 = vsub.f32 %v1087_v22, %v1106_v21 }
 0x5bd   :  { %v1115_v2 = vmul.f32 %v1107_v58, %v1107_v58  ;;  %v1116_v4 = vmul.f32 %v1108_v59, %v1108_v59  ;;  %v1117_v43 = vmul.f32 %v1109_v0, %v1109_v0  ;;  %v1118_v9 = vmul.f32 %v1110_v1, %v1110_v1 }
 0x5be   :  { %v1119_v11 = vmul.f32 %v1111_v8, %v1111_v8  ;;  %v1120_v15 = vmul.f32 %v1112_v54, %v1112_v54  ;;  %v1121_v20 = vmul.f32 %v1113_v42, %v1113_v42  ;;  %v1122_v51 = vmul.f32 %v1114_v60, %v1114_v60 }
 0x5bf   :  { %v1123_v41 = vadd.f32 %v1116_v4, %v1115_v2 }
 0x5c1   :  { %v1124_v47 = vadd.f32 %v1123_v41, %v1117_v43 }
 0x5c3   :  { %v1125_v12 = vadd.f32 %v1124_v47, %v1118_v9 }
 0x5c5   :  { %v1126_v57 = vadd.f32 %v1125_v12, %v1119_v11 }
 0x5c7   :  { %v1127_v23 = vadd.f32 %v1126_v57, %v1120_v15 }
 0x5c9   :  { %v1128_v10 = vadd.f32 %v1127_v23, %v1121_v20 }
 0x5cb   :  { %v1129_v6 = vadd.f32 %v1128_v10, %v1122_v51 }
 0x5cd   :  { %v1130_v17 = vrot.slane %v1129_v6, 4 }
 0x5cf   :  { %v1131_v19 = vadd.f32 %v1130_v17, %v1129_v6  ;;  %v1191_v17 = vpop.xlane.xlu1 %1190 }
 0x5d1   :  { %v1132_v28 = vrot.slane %v1131_v19, 2 }
 0x5d3   :  { %v1133_v31 = vadd.f32 %v1132_v28, %v1131_v19 }
 0x5d5   :  { %v1134_v32 = vrot.slane %v1133_v31, 1 }
 0x5d7   :  { %v1135_v35 = vadd.f32 %v1134_v32, %v1133_v31  ;;  %v2329_v32 = vmax.f32 %v1191_v17, 1e-24 }
 0x5d9   :  { %v1136_v37 = vmul.f32 0.015625, %v1135_v35  ;;  %vm1284_vm14 = vweird.f32 %v2329_v32 }
 0x5db   :  { %v1137_v39 = vadd.f32 1e-05, %v1136_v37 }
 0x5dd   :  { %1781 = vrsqrt.f32 %v1137_v39  ;;  %vm1144_vm11 = vweird.f32 %v1137_v39 }
 0x5e3   :  { %v1782_v40 = vpop.eup %1781 }
 0x5e4   :  { %v1139_v24 = vmul.f32 %v1782_v40, %v1137_v39  ;;  %vm1145_vm0 = vweird.f32 %v1782_v40 }
 0x5e5   :  { %vm1146_vm12 = vmor %vm1144_vm11, %vm1145_vm0 }
 0x5e6   :  { %v1140_v63 = vmul.f32 %v1782_v40, %v1139_v24 }
 0x5e8   :  { %v1141_v45 = vmul.f32 0.5, %v1140_v63 }
 0x5ea   :  { %v1142_v25 = vsub.f32 1.5, %v1141_v45 }
 0x5ec   :  { %v1143_v46 = vmul.f32 %v1782_v40, %v1142_v25 }
 0x5ee   :  { %v1147_v26 = vsel %vm1146_vm12, %v1782_v40, %v1143_v46 }
 0x5ef   :  { %v1149_v3 = vmul.f32 %v1147_v26, %v1108_v59  ;;  %v1148_v27 = vmul.f32 %v1147_v26, %v1107_v58  ;;  %v1150_v16 = vmul.f32 %v1147_v26, %v1109_v0  ;;  %v1151_v49 = vmul.f32 %v1147_v26, %v1110_v1 }
 0x5f0   :  { %v1152_v22 = vmul.f32 %v1147_v26, %v1111_v8  ;;  %v1153_v50 = vmul.f32 %v1147_v26, %v1112_v54  ;;  %v1154_v0 = vmul.f32 %v1147_v26, %v1113_v42  ;;  %v1155_v1 = vmul.f32 %v1147_v26, %v1114_v60 }
 0x5f1   :  { %v1160_v30 = vmul.f32 %v1773_v38, %v1149_v3  ;;  %v1159_v62 = vmul.f32 %v1773_v38, %v1148_v27  ;;  %v1161_v29 = vmul.f32 %v1773_v38, %v1150_v16  ;;  %v1162_v55 = vmul.f32 %v1773_v38, %v1151_v49 }
 0x5f2   :  { %v1163_v2 = vmul.f32 %v1773_v38, %v1152_v22  ;;  %v1164_v4 = vmul.f32 %v1773_v38, %v1153_v50  ;;  %v1165_v54 = vmul.f32 %v1773_v38, %v1154_v0  ;;  %v1166_v47 = vmul.f32 %v1773_v38, %v1155_v1 }
 0x5f3   :  { %v1171_v52 = vadd.f32 %v1774_v48, %v1160_v30  ;;  %v1170_v53 = vadd.f32 %v1774_v48, %v1159_v62  ;;  %v1172_v36 = vadd.f32 %v1774_v48, %v1161_v29  ;;  %v1173_v58 = vadd.f32 %v1774_v48, %v1162_v55 }
 0x5f4   :  { %v1174_v59 = vadd.f32 %v1774_v48, %v1163_v2  ;;  %v1175_v43 = vadd.f32 %v1774_v48, %v1164_v4  ;;  %v1176_v11 = vadd.f32 %v1774_v48, %v1165_v54  ;;  %v1177_v12 = vadd.f32 %v1774_v48, %v1166_v47 }
 0x5f5   :  { %v1203_v56 = vmul.f32 %v1171_v52, %v1171_v52  ;;  %v1202_v18 = vmul.f32 %v1170_v53, %v1170_v53  ;;  %v1204_v21 = vmul.f32 %v1172_v36, %v1172_v36  ;;  %v1205_v41 = vmul.f32 %v1173_v58, %v1173_v58 }
 0x5f6   :  { %v1206_v8 = vmul.f32 %v1174_v59, %v1174_v59  ;;  %v1207_v9 = vmul.f32 %v1175_v43, %v1175_v43  ;;  %v1208_v15 = vmul.f32 %v1176_v11, %v1176_v11  ;;  %v1226_v57 = vmul.f32 %v1170_v53, %v2241_v44 }
 0x5f7   :  { %1212 = vadd.xlane.f32.xlu2 %v1203_v56  ;;  %1210 = vadd.xlane.f32.xlu1 %v1202_v18  ;;  %v1209_v20 = vmul.f32 %v1177_v12, %v1177_v12  ;;  %v1227_v42 = vmul.f32 %v1171_v52, %v2254_v14  ;;  %v1229_v60 = vmul.f32 %v1173_v58, %v2237_v5  ;;  %v1187_v14 = vpop.xlane.xlu0 %1186  ;;  %v1193_v5 = vpop.xlane.xlu2 %1192 }
 0x5f8   :  { %1214 = vadd.xlane.f32.xlu0 %v1204_v21  ;;  %v1228_v23 = vmul.f32 %v1172_v36, %v2239_v7  ;;  %v1230_v51 = vmul.f32 %v1174_v59, %v2252_v61  ;;  %v1232_v10 = vmul.f32 %v1176_v11, %v2250_v13  ;;  %v1231_v6 = vmul.f32 %v1175_v43, %v2287_v34  ;;  %v1195_v7 = vpop.xlane.xlu1 %1194 }
 0x5f9   :  { %v1233_v44 = vmul.f32 %v1177_v12, %v2285_v33  ;;  %v2327_v28 = vmax.f32 %v1193_v5, 1e-24  ;;  %v2331_v61 = vmax.f32 %v1187_v14, 1e-24  ;;  %v2336_v34 = vmax.f32 %v1195_v7, 1e-24 }
 0x5fb   :  { %1783 = vrsqrt.f32 %v2327_v28  ;;  %vm1294_vm13 = vweird.f32 %v2327_v28  ;;  %vm1264_vm15 = vweird.f32 %v2331_v61  ;;  %vm1304_vm3 = vweird.f32 %v2336_v34 }
 0x5fc   :  { %1785 = vrsqrt.f32 %v2329_v32 }
 0x5fd   :  { %1787 = vrsqrt.f32 %v2331_v61 }
 0x5ff   :  { %1216 = vadd.xlane.f32.xlu2 %v1205_v41  ;;  %1218 = vadd.xlane.f32.xlu1 %v1206_v8  ;;  %v1189_v19 = vpop.xlane.xlu0 %1188  ;;  %v1199_v31 = vpop.xlane.xlu2 %1198 }
 0x600   :  { %1220 = vadd.xlane.f32.xlu0 %v1207_v9  ;;  %v2333_v13 = vmax.f32 %v1199_v31, 1e-24  ;;  %v2339_v33 = vmax.f32 %v1189_v19, 1e-24  ;;  %v1201_v37 = vpop.xlane.xlu1 %1200 }
 0x601   :  { %v2347_v40 = vpop.eup %1783  ;;  %v2349_v24 = vmax.f32 %v1201_v37, 1e-24 }
 0x602   :  { %1789 = vrsqrt.f32 %v2333_v13  ;;  %v2351_v63 = vpop.eup %1785  ;;  %v1289_v38 = vmul.f32 %v2347_v40, %v2327_v28  ;;  %vm1295_vm1 = vweird.f32 %v2347_v40  ;;  %vm1274_vm5 = vweird.f32 %v2339_v33 }
 0x603   :  { %1791 = vrsqrt.f32 %v2336_v34  ;;  %v2353_v45 = vpop.eup %1787  ;;  %v1279_v3 = vmul.f32 %v2351_v63, %v2329_v32  ;;  %vm1285_vm2 = vweird.f32 %v2351_v63  ;;  %vm1324_vm6 = vweird.f32 %v2333_v13  ;;  %vm2437_vm10 = vmor %vm1294_vm13, %vm1295_vm1 }
 0x604   :  { %1793 = vrsqrt.f32 %v2339_v33  ;;  %v1259_v48 = vmul.f32 %v2353_v45, %v2331_v61  ;;  %v1290_v49 = vmul.f32 %v2347_v40, %v1289_v38  ;;  %vm1265_vm4 = vweird.f32 %v2353_v45  ;;  %vm2456_vm0 = vmor %vm1284_vm14, %vm1285_vm2  ;;  %v1451_v38 = vld [vmem:[%s2702_s3 + $0x8] sm:$0xff] }
 0x605   :  { %v1280_v29 = vmul.f32 %v2351_v63, %v1279_v3  ;;  %vm2471_vm11 = vmor %vm1264_vm15, %vm1265_vm4 }
 0x606   :  { %v1260_v22 = vmul.f32 %v2353_v45, %v1259_v48  ;;  %v1291_v36 = vmul.f32 0.5, %v1290_v49 }
 0x607   :  { %1222 = vadd.xlane.f32.xlu2 %v1208_v15  ;;  %1234 = vadd.xlane.f32.xlu1 %v1226_v57  ;;  %v1197_v35 = vpop.xlane.xlu0 %1196  ;;  %v1281_v18 = vmul.f32 0.5, %v1280_v29 }
 0x608   :  { %1224 = vadd.xlane.f32.xlu0 %v1209_v20  ;;  %v2344_v39 = vmax.f32 %v1197_v35, 1e-24  ;;  %v2356_v25 = vpop.eup %1789  ;;  %v1261_v21 = vmul.f32 0.5, %v1260_v22  ;;  %v1292_v47 = vsub.f32 1.5, %v1291_v36 }
 0x609   :  { %v2358_v46 = vpop.eup %1791  ;;  %v1319_v27 = vmul.f32 %v2356_v25, %v2333_v13  ;;  %v1282_v15 = vsub.f32 1.5, %v1281_v18  ;;  %vm1325_vm9 = vweird.f32 %v2356_v25  ;;  %v1450_v13 = vld [vmem:[%s2702_s3] sm:$0xff] }
 0x60a   :  { %1795 = vrsqrt.f32 %v2344_v39  ;;  %v2363_v26 = vpop.eup %1793  ;;  %v1299_v30 = vmul.f32 %v2358_v46, %v2336_v34  ;;  %v1262_v12 = vsub.f32 1.5, %v1261_v21  ;;  %vm1305_vm7 = vweird.f32 %v2358_v46  ;;  %vm2498_vm13 = vmor %vm1324_vm6, %vm1325_vm9 }
 0x60b   :  { %1797 = vrsqrt.f32 %v2349_v24  ;;  %v1269_v62 = vmul.f32 %v2363_v26, %v2339_v33  ;;  %v1320_v52 = vmul.f32 %v2356_v25, %v1319_v27  ;;  %v2416_v14 = vmul.f32 %v2351_v63, %v1282_v15  ;;  %vm2489_vm12 = vmor %vm1304_vm3, %vm1305_vm7 }
 0x60c   :  { %v1300_v55 = vmul.f32 %v2358_v46, %v1299_v30  ;;  %vm1275_vm8 = vweird.f32 %v2363_v26  ;;  %vm1314_vm1 = vweird.f32 %v2344_v39 }
 0x60d   :  { %v1270_v56 = vmul.f32 %v2363_v26, %v1269_v62  ;;  %v1321_v43 = vmul.f32 0.5, %v1320_v52  ;;  %vm2514_vm15 = vmor %vm1274_vm5, %vm1275_vm8  ;;  %vm1466_vm8 = vcmask 7168  }
 0x60e   :  { %v1301_v54 = vmul.f32 0.5, %v1300_v55  ;;  %v1287_v55 = vsel %vm2456_vm0, %v2351_v63, %v2416_v14  ;;  %v1452_v14 = vld [vmem:[%s2702_s3 + $0x10] sm:$0xff] }
 0x60f   :  { %1236 = vadd.xlane.f32.xlu2 %v1227_v42  ;;  %1240 = vadd.xlane.f32.xlu1 %v1229_v60  ;;  %v1271_v9 = vmul.f32 0.5, %v1270_v56  ;;  %v1322_v20 = vsub.f32 1.5, %v1321_v43  ;;  %v2409_v60 = vmul.f32 %v2347_v40, %v1292_v47 }
 0x610   :  { %1238 = vadd.xlane.f32.xlu0 %v1228_v23  ;;  %v2371_v16 = vpop.eup %1795  ;;  %v1302_v23 = vsub.f32 1.5, %v1301_v54 }
 0x611   :  { %v2380_v50 = vpop.eup %1797  ;;  %v1309_v53 = vmul.f32 %v2371_v16, %v2344_v39  ;;  %v1272_v42 = vsub.f32 1.5, %v1271_v9  ;;  %v2442_v3 = vmul.f32 %v2356_v25, %v1322_v20  ;;  %v1297_v36 = vsel %vm2437_vm10, %v2347_v40, %v2409_v60 }
 0x612   :  { %v1329_v2 = vmul.f32 %v2380_v50, %v2349_v24  ;;  %v2461_v62 = vmul.f32 %v2358_v46, %v1302_v23  ;;  %vm1315_vm14 = vweird.f32 %v2371_v16  ;;  %vm1335_vm10 = vweird.f32 %v2380_v50 }
 0x613   :  { %v1310_v41 = vmul.f32 %v2371_v16, %v1309_v53  ;;  %v2450_v30 = vmul.f32 %v2363_v26, %v1272_v42  ;;  %vm2541_vm3 = vmor %vm1314_vm1, %vm1315_vm14 }
 0x614   :  { %v1330_v11 = vmul.f32 %v2380_v50, %v1329_v2  ;;  %v1307_v33 = vsel %vm2489_vm12, %v2358_v46, %v2461_v62  ;;  %vm1334_vm12 = vweird.f32 %v2349_v24 }
 0x615   :  { %v1311_v57 = vmul.f32 0.5, %v1310_v41 }
 0x617   :  { %1242 = vadd.xlane.f32.xlu2 %v1230_v51  ;;  %1246 = vadd.xlane.f32.xlu1 %v1232_v10  ;;  %v1331_v51 = vmul.f32 0.5, %v1330_v11  ;;  %v1312_v48 = vsub.f32 1.5, %v1311_v57 }
 0x618   :  { %1244 = vadd.xlane.f32.xlu0 %v1231_v6 }
 0x619   :  { %v1332_v52 = vsub.f32 1.5, %v1331_v51  ;;  %v2503_v2 = vmul.f32 %v2371_v16, %v1312_v48 }
 0x61b   :  { %v2532_v54 = vmul.f32 %v2380_v50, %v1332_v52  ;;  %v1317_v42 = vsel %vm2541_vm3, %v2371_v16, %v2503_v2  ;;  %vm1336_vm3 = vmor %vm1334_vm12, %vm1335_vm10 }
 0x61d   :  { %v1337_v24 = vsel %vm1336_vm3, %v2380_v50, %v2532_v54 }
 0x61f   :  { %1248 = vadd.xlane.f32.xlu2 %v1233_v44  ;;  %v2413_v44 = vmul.f32 %v2353_v45, %v1262_v12 }
 0x66a   :  { %v1213_v4 = vpop.xlane.xlu2 %1212  ;;  %v1211_v58 = vpop.xlane.xlu1 %1210 }
 0x66b   :  { %v2389_v59 = vmax.f32 %v1213_v4, 1e-24  ;;  %v2391_v0 = vmax.f32 %v1211_v58, 1e-24  ;;  %v1215_v1 = vpop.xlane.xlu0 %1214  ;;  %v1267_v4 = vsel %vm2471_vm11, %v2353_v45, %v2413_v44  ;;  %v1327_v58 = vsel %vm2498_vm13, %v2356_v25, %v2442_v3  ;;  %v1454_v25 = vld [vmem:[%s2702_s3 + $0x20] sm:$0xff] }
 0x66c   :  { %v2395_v8 = vmax.f32 %v1215_v1, 1e-24  ;;  %v1277_v45 = vsel %vm2514_vm15, %v2363_v26, %v2450_v30  ;;  %v1455_v26 = vld [vmem:[%s2702_s3 + $0x28] sm:$0xff] }
 0x66d   :  { %1799 = vrsqrt.f32 %v2389_v59  ;;  %vm1360_vm4 = vweird.f32 %v2391_v0  ;;  %vm1370_vm7 = vweird.f32 %v2389_v59 }
 0x66e   :  { %1801 = vrsqrt.f32 %v2391_v0  ;;  %vm1380_vm9 = vweird.f32 %v2395_v8 }
 0x66f   :  { %1803 = vrsqrt.f32 %v2395_v8 }
 0x672   :  { %v1217_v10 = vpop.xlane.xlu2 %1216  ;;  %v1219_v6 = vpop.xlane.xlu1 %1218 }
 0x673   :  { %v2419_v17 = vpop.eup %1799  ;;  %v2421_v5 = vmax.f32 %v1217_v10, 1e-24  ;;  %v2423_v19 = vmax.f32 %v1219_v6, 1e-24  ;;  %v1221_v7 = vpop.xlane.xlu0 %1220 }
 0x674   :  { %v2427_v31 = vpop.eup %1801  ;;  %v1365_v35 = vmul.f32 %v2419_v17, %v2389_v59  ;;  %v2431_v37 = vmax.f32 %v1221_v7, 1e-24  ;;  %vm1371_vm6 = vweird.f32 %v2419_v17 }
 0x675   :  { %v2444_v27 = vpop.eup %1803  ;;  %v1355_v49 = vmul.f32 %v2427_v31, %v2391_v0  ;;  %1805 = vrsqrt.f32 %v2421_v5  ;;  %vm1361_vm2 = vweird.f32 %v2427_v31  ;;  %vm2577_vm15 = vmor %vm1370_vm7, %vm1371_vm6  ;;  %vm1390_vm1 = vweird.f32 %v2421_v5 }
 0x676   :  { %v1366_v29 = vmul.f32 %v2419_v17, %v1365_v35  ;;  %v1375_v22 = vmul.f32 %v2444_v27, %v2395_v8  ;;  %1807 = vrsqrt.f32 %v2423_v19  ;;  %vm1362_vm5 = vmor %vm1360_vm4, %vm1361_vm2  ;;  %vm1381_vm14 = vweird.f32 %v2444_v27 }
 0x677   :  { %v1356_v53 = vmul.f32 %v2427_v31, %v1355_v49  ;;  %1809 = vrsqrt.f32 %v2431_v37  ;;  %vm1400_vm2 = vweird.f32 %v2423_v19  ;;  %vm1382_vm4 = vmor %vm1380_vm9, %vm1381_vm14  ;;  %vm1410_vm7 = vweird.f32 %v2431_v37 }
 0x678   :  { %v1367_v56 = vmul.f32 0.5, %v1366_v29  ;;  %v1376_v18 = vmul.f32 %v2444_v27, %v1375_v22 }
 0x679   :  { %v1357_v34 = vmul.f32 0.5, %v1356_v53 }
 0x67a   :  { %v1377_v1 = vmul.f32 0.5, %v1376_v18  ;;  %v1223_v43 = vpop.xlane.xlu2 %1222  ;;  %v1235_v41 = vpop.xlane.xlu1 %1234  ;;  %v1368_v47 = vsub.f32 1.5, %v1367_v56 }
 0x67b   :  { %v2534_v9 = vpop.eup %1805  ;;  %v1358_v39 = vsub.f32 1.5, %v1357_v34  ;;  %v2536_v11 = vmax.f32 %v1223_v43, 1e-24  ;;  %v1225_v12 = vpop.xlane.xlu0 %1224  ;;  %v1338_v0 = vmul.f32 %v1267_v4, %v1235_v41 }
 0x67c   :  { %v2545_v15 = vpop.eup %1807  ;;  %v1385_v57 = vmul.f32 %v2534_v9, %v2421_v5  ;;  %v2550_v20 = vmax.f32 %v1225_v12, 1e-24  ;;  %v1378_v6 = vsub.f32 1.5, %v1377_v1  ;;  %v1369_v49 = vmul.f32 %v2419_v17, %v1368_v47 }
 0x67d   :  { %v2556_v23 = vpop.eup %1809  ;;  %v1395_v51 = vmul.f32 %v2545_v15, %v2423_v19  ;;  %1811 = vrsqrt.f32 %v2536_v11  ;;  %v1359_v10 = vmul.f32 %v2427_v31, %v1358_v39  ;;  %vm1391_vm11 = vweird.f32 %v2534_v9 }
 0x67e   :  { %v1386_v44 = vmul.f32 %v2534_v9, %v1385_v57  ;;  %v1405_v7 = vmul.f32 %v2556_v23, %v2431_v37  ;;  %1813 = vrsqrt.f32 %v2550_v20  ;;  %v1379_v34 = vmul.f32 %v2444_v27, %v1378_v6 }
 0x67f   :  { %v1396_v35 = vmul.f32 %v2545_v15, %v1395_v51  ;;  %v1363_v48 = vsel %vm1362_vm5, %v2427_v31, %v1359_v10  ;;  %v1373_v1 = vsel %vm2577_vm15, %v2419_v17, %v1369_v49  ;;  %vm1392_vm5 = vmor %vm1390_vm1, %vm1391_vm11  ;;  %vm1401_vm0 = vweird.f32 %v2545_v15 }
 0x680   :  { %v1387_v30 = vmul.f32 0.5, %v1386_v44  ;;  %v1406_v29 = vmul.f32 %v2556_v23, %v1405_v7  ;;  %v1434_v22 = vmul.f32 %v1363_v48, %v1338_v0  ;;  %v1383_v0 = vsel %vm1382_vm4, %v2444_v27, %v1379_v34  ;;  %vm1402_vm14 = vmor %vm1400_vm2, %vm1401_vm0 }
 0x681   :  { %v1397_v32 = vmul.f32 0.5, %v1396_v35  ;;  %vm1411_vm6 = vweird.f32 %v2556_v23  ;;  %vm1420_vm11 = vweird.f32 %v2536_v11  ;;  %vm1430_vm2 = vweird.f32 %v2550_v20 }
 0x682   :  { %v1388_v52 = vsub.f32 1.5, %v1387_v30  ;;  %v1407_v31 = vmul.f32 0.5, %v1406_v29  ;;  %v1442_v53 = vsub.f32 1.0, %v1434_v22  ;;  %v1237_v59 = vpop.xlane.xlu2 %1236  ;;  %v1241_v18 = vpop.xlane.xlu1 %1240  ;;  %vm1412_vm15 = vmor %vm1410_vm7, %vm1411_vm6 }
 0x683   :  { %v2582_v4 = vpop.eup %1811  ;;  %v1339_v43 = vmul.f32 %v1277_v45, %v1237_v59  ;;  %v1239_v41 = vpop.xlane.xlu0 %1238  ;;  %v1398_v39 = vsub.f32 1.5, %v1397_v32  ;;  %v1341_v51 = vmul.f32 %v1297_v36, %v1241_v18 }
 0x684   :  { %v2592_v47 = vpop.eup %1813  ;;  %v1415_v12 = vmul.f32 %v2582_v4, %v2536_v11  ;;  %v1389_v57 = vmul.f32 %v2534_v9, %v1388_v52  ;;  %v1408_v17 = vsub.f32 1.5, %v1407_v31  ;;  %v1340_v40 = vmul.f32 %v1287_v55, %v1239_v41  ;;  %v1453_v52 = vld [vmem:[%s2702_s3 + $0x18] sm:$0xff] }
 0x685   :  { %v1425_v45 = vmul.f32 %v2592_v47, %v2550_v20  ;;  %v1435_v10 = vmul.f32 %v1373_v1, %v1339_v43  ;;  %v1458_v8 = vmul.f32 %v1450_v13, %v1442_v53  ;;  %v1399_v55 = vmul.f32 %v2545_v15, %v1398_v39  ;;  %v1456_v1 = vld [vmem:[%s2702_s3 + $0x30] sm:$0xff] }
 0x686   :  { %v1416_v60 = vmul.f32 %v2582_v4, %v1415_v12  ;;  %v1393_v36 = vsel %vm1392_vm5, %v2534_v9, %v1389_v57  ;;  %v1436_v44 = vmul.f32 %v1383_v0, %v1340_v40  ;;  %v1409_v35 = vmul.f32 %v2556_v23, %v1408_v17  ;;  %v1457_v40 = vld [vmem:[%s2702_s3 + $0x38] sm:$0xff]  ;;  %s1498_s3 = sshll.u32 %s2712_s13, 4  ;;  %s1499_s3 = int_to_ptr.hbm [resolvable:$true] %s1498_s3 }
 0x687   :  { %v1426_v5 = vmul.f32 %v2592_v47, %v1425_v45  ;;  %v1443_v28 = vsub.f32 1.0, %v1435_v10  ;;  %v1437_v6 = vmul.f32 %v1393_v36, %v1341_v51  ;;  %vm1421_vm9 = vweird.f32 %v2582_v4 }
 0x688   :  { %v1417_v63 = vmul.f32 0.5, %v1416_v60  ;;  %v1444_v7 = vsub.f32 1.0, %v1436_v44  ;;  %v1467_v22 = vsel %vm1466_vm8, %v1458_v8, 0.0  ;;  %v1403_v34 = vsel %vm1402_vm14, %v2545_v15, %v1399_v55  ;;  %vm1422_vm1 = vmor %vm1420_vm11, %vm1421_vm9 }
 0x689   :  { %v1427_v9 = vmul.f32 0.5, %v1426_v5  ;;  %v1459_v27 = vmul.f32 %v1451_v38, %v1443_v28  ;;  %v1445_v49 = vsub.f32 1.0, %v1437_v6  ;;  %v1413_v46 = vsel %vm1412_vm15, %v2556_v23, %v1409_v35 }
 0x68a   :  { %v1418_v48 = vsub.f32 1.5, %v1417_v63  ;;  %v1243_v30 = vpop.xlane.xlu2 %1242  ;;  %v1247_v29 = vpop.xlane.xlu1 %1246  ;;  %v1460_v31 = vmul.f32 %v1452_v14, %v1444_v7  ;;  %vm1431_vm13 = vweird.f32 %v2592_v47  ;;  %vm1489_vm5 = vcmask 0  }
 0x68b   :  { %v1468_v32 = vsel %vm1466_vm8, %v1459_v27, 0.0  ;;  %v1245_v53 = vpop.xlane.xlu0 %1244  ;;  %v1428_v56 = vsub.f32 1.5, %v1427_v9  ;;  %v1342_v11 = vmul.f32 %v1307_v33, %v1243_v30  ;;  %v1344_v19 = vmul.f32 %v1327_v58, %v1247_v29  ;;  %vm1432_vm4 = vmor %vm1430_vm2, %vm1431_vm13 }
 0x68c   :  { %v1469_v59 = vadd.f32 %v1468_v32, %v1467_v22  ;;  %v1419_v18 = vmul.f32 %v2582_v4, %v1418_v48  ;;  %v1343_v37 = vmul.f32 %v1317_v42, %v1245_v53  ;;  %v1461_v62 = vmul.f32 %v1453_v52, %v1445_v49 }
 0x68d   :  { %v1470_v61 = vsel %vm1466_vm8, %v1460_v31, 0.0  ;;  %v1438_v33 = vmul.f32 %v1403_v34, %v1342_v11  ;;  %v1429_v16 = vmul.f32 %v2592_v47, %v1428_v56 }
 0x68e   :  { %v1423_v15 = vsel %vm1422_vm1, %v2582_v4, %v1419_v18  ;;  %v1471_v13 = vadd.f32 %v1470_v61, %v1469_v59  ;;  %v1439_v21 = vmul.f32 %v1413_v46, %v1343_v37  ;;  %v1472_v23 = vsel %vm1466_vm8, %v1461_v62, 0.0 }
 0x68f   :  { %v1440_v3 = vmul.f32 %v1423_v15, %v1344_v19  ;;  %v1446_v58 = vsub.f32 1.0, %v1438_v33  ;;  %v1433_v51 = vsel %vm1432_vm4, %v2592_v47, %v1429_v16 }
 0x690   :  { %v1447_v42 = vsub.f32 1.0, %v1439_v21  ;;  %v1473_v41 = vadd.f32 %v1472_v23, %v1471_v13 }
 0x691   :  { %v1448_v2 = vsub.f32 1.0, %v1440_v3  ;;  %v1462_v4 = vmul.f32 %v1454_v25, %v1446_v58 }
 0x692   :  { %v1249_v43 = vpop.xlane.xlu2 %1248  ;;  %v1463_v39 = vmul.f32 %v1455_v26, %v1447_v42 }
 0x693   :  { %v1345_v12 = vmul.f32 %v1337_v24, %v1249_v43  ;;  %v1474_v57 = vsel %vm1466_vm8, %v1462_v4, 0.0  ;;  %v1464_v17 = vmul.f32 %v1456_v1, %v1448_v2 }
 0x694   :  { %v1475_v20 = vadd.f32 %v1474_v57, %v1473_v41  ;;  %v1476_v10 = vsel %vm1466_vm8, %v1463_v39, 0.0 }
 0x695   :  { %v1441_v45 = vmul.f32 %v1433_v51, %v1345_v12  ;;  %v1478_v54 = vsel %vm1466_vm8, %v1464_v17, 0.0 }
 0x696   :  { %v1477_v60 = vadd.f32 %v1476_v10, %v1475_v20 }
 0x697   :  { %v1449_v50 = vsub.f32 1.0, %v1441_v45 }
 0x698   :  { %v1479_v38 = vadd.f32 %v1478_v54, %v1477_v60 }
 0x699   :  { %v1465_v8 = vmul.f32 %v1457_v40, %v1449_v50 }
 0x69b   :  { %v1480_v36 = vsel %vm1466_vm8, %v1465_v8, 0.0 }
 0x69c   :  { %v1481_v0 = vadd.f32 %v1480_v36, %v1479_v38 }
 0x69e   :  { %v1482_v5 = vrot.slane %v1481_v0, 4 }
 0x6a0   :  { %v1483_v47 = vadd.f32 %v1482_v5, %v1481_v0 }
 0x6a2   :  { %v1484_v28 = vrot.slane %v1483_v47, 2 }
 0x6a4   :  { %v1485_v6 = vadd.f32 %v1484_v28, %v1483_v47 }
 0x6a6   :  { %v1486_v44 = vrot.slane %v1485_v6, 1 }
 0x6a8   :  { %v1487_v63 = vadd.f32 %v1486_v44, %v1485_v6 }
 0x6aa   :  { %v1488_v14 = vmul.f32 0.03125, %v1487_v63 }
 0x6ac   :  { %1490 = vst.msk [vmem:[#allocation13] sm:$0x1] %vm1489_vm5, %v1488_v14 }
 0x6ad   :  { %1501 = dma.vmem_to_hbm [thread:$0]  %s1497_s19, 16, %s1499_s3, [#allocation4]  }
 0x6ae   :  { %1979 = dma.done.wait [#allocation4], 16  }
 0x6af   :  { %1980 = vsyncadd [#allocation4], 4294967280 }
 0x6b0   :  { %1506 = vsyncpa [#allocation3], 1 }
 0x6b1   :  { %1507 = vsyncpa [#allocation7], 1 }
 0x6b2   :  { %1508 = vsyncpa [#allocation10], 1 }
 0x6b3   :  { %1509 = vsyncpa [#allocation4], 1 }
 0x6b4   :  { %1510 = vsyncpa [#allocation5], 1 }

</bundles_post_ra>
